<compile_context>
chip_gen: v7x
topology: tpu7x:2x2x1
jax: 0.10.0
libtpu: 0.0.40
codegen_flags: <defaults>
</compile_context>

<pallas_src>
import jax
import jax.numpy as jnp
from jax.experimental import pallas as pl
from jax.experimental.pallas import tpu as pltpu


def _round_up(x, m):
    return (x + m - 1) // m * m


def _make_wsconv_kernel(tap_shifts, m_out):
    """Fused im2col + matmul kernel for one image.

    x_ref: [M_in, Cp]  bf16  flattened padded NHWC image (+ shift slack rows)
    w_ref: [T, Cp, Np] bf16  per-tap weight slices, WS scale pre-folded
    b_ref: [1, Np]     f32   bias row
    o_ref: [M_out, Np] f32   flattened output rows (lane-dense)
    """
    def kernel(x_ref, w_ref, b_ref, o_ref):
        acc = None
        for t, s in enumerate(tap_shifts):
            # Static (possibly sublane-unaligned) window; cheap VMEM relayout,
            # no HBM traffic — this replaces the host-side im2col entirely.
            xs = x_ref[s:s + m_out, :]
            part = jnp.dot(xs, w_ref[t], preferred_element_type=jnp.float32)  # MXU
            acc = part if acc is None else acc + part
        # Single lane-dense store (output-stationary: no k-step accumulator RMW).
        o_ref[...] = (acc + b_ref[...]).astype(o_ref.dtype)
    return kernel


def ws_conv2d(x, weight, bias, *, stride=1, padding=0):
    """x: [B, C_in, H, W] f32 (NCHW); weight: [C_out, C_in, kh, kw]; bias: [C_out].

    Returns [B, C_out, Ho, Wo] f32, matching the PyTorch WSConv2d forward.
    """
    B, C_in, H, W = x.shape
    C_out, _, kh, kw = weight.shape
    scale = float((2.0 / (C_in * kh * kw)) ** 0.5)

    Hp, Wp = H + 2 * padding, W + 2 * padding
    Ho = (Hp - kh) // stride + 1
    Wo = (Wp - kw) // stride + 1

    Cp = _round_up(C_in, 128)          # lane-dense contraction dim
    Np = _round_up(C_out, 128)         # lane-dense output dim
    T = kh * kw
    M_img = Hp * Wp                    # flattened padded-input spatial size
    max_shift = (kh - 1) * Wp + (kw - 1)
    M_out = _round_up(M_img, 16)                 # bf16 packs 16 sublanes/vreg
    M_in = M_out + _round_up(max_shift, 16)      # shifted windows never run OOB

    # --- host-side prep: one NHWC transpose + one bf16 cast, no im2col slab ---
    x_nhwc = jnp.transpose(x, (0, 2, 3, 1))
    if padding > 0:
        x_nhwc = jnp.pad(x_nhwc, ((0, 0), (padding, padding), (padding, padding), (0, 0)))
    x_flat = jnp.pad(x_nhwc, ((0, 0), (0, 0), (0, 0), (0, Cp - C_in)))
    x_flat = x_flat.reshape(B, M_img, Cp)
    x_flat = jnp.pad(x_flat, ((0, 0), (0, M_in - M_img), (0, 0))).astype(jnp.bfloat16)

    # Per-tap [C_in, C_out] weight slices (channel-last K order), WS scale folded.
    w_taps = jnp.transpose(weight, (2, 3, 1, 0)).reshape(T, C_in, C_out) * scale
    w_taps = jnp.pad(w_taps, ((0, 0), (0, Cp - C_in), (0, Np - C_out))).astype(jnp.bfloat16)
    b_row = jnp.pad(bias.reshape(1, C_out).astype(jnp.float32), ((0, 0), (0, Np - C_out)))

    # Flattened row shift per tap (stride-1 identity: read row m + i*Wp + j).
    tap_shifts = [i * Wp + j for i in range(kh) for j in range(kw)]

    # Explicit VMEM budget (double-buffered x/out blocks + resident weights),
    # with a floor at the 32 MiB scoped default — v7x-safe sizing.
    vmem_need = 2 * (M_in * Cp * 2 + T * Cp * Np * 2 + M_out * Np * 4 + Np * 4) + (2 << 20)
    vmem_limit = int(min(max(32 << 20, vmem_need), 128 << 20))

    out = pl.pallas_call(
        _make_wsconv_kernel(tap_shifts, M_out),
        # Output kept f32 to match the PyTorch module / reference check; flip to
        # bf16 here (and in the epilogue astype) to halve padded-output HBM bytes.
        out_shape=jax.ShapeDtypeStruct((B, M_out, Np), jnp.float32),
        grid=(B,),
        in_specs=[
            pl.BlockSpec((None, M_in, Cp), lambda b: (b, 0, 0)),   # one image / step
            pl.BlockSpec((T, Cp, Np), lambda b: (0, 0, 0)),        # weights resident
            pl.BlockSpec((1, Np), lambda b: (0, 0)),               # bias row
        ],
        out_specs=pl.BlockSpec((None, M_out, Np), lambda b: (b, 0, 0)),
        compiler_params=pltpu.CompilerParams(
            dimension_semantics=("parallel",),    # B images split across v7x's 2 TCs
            vmem_limit_bytes=vmem_limit,
        ),
    )(x_flat, w_taps, b_row)

    # Valid outputs live at flattened rows m = h*Wp + w (stride-1 positions);
    # strided outputs are a subsample.  Slice padding off, then restore NCHW to
    # match the PyTorch module — a consumer that can stay NHWC should skip the
    # final transpose (it is a pure layout round-trip in HBM).
    out = out[:, :M_img, :C_out].reshape(B, Hp, Wp, C_out)
    out = out[:, ::stride, ::stride, :][:, :Ho, :Wo, :]
    return jnp.transpose(out, (0, 3, 1, 2))


if __name__ == "__main__":
    key = jax.random.PRNGKey(0)
    kx, kw_ = jax.random.split(key)

    # Small shapes consistent with the module: B=2, C_in=4, C_out=8, 16x16, k=3, s=1, p=0
    B, C_in, C_out, H, W, ksize = 2, 4, 8, 16, 16, 3
    x = jax.random.normal(kx, (B, C_in, H, W), dtype=jnp.float32)
    weight = jax.random.normal(kw_, (C_out, C_in, ksize, ksize), dtype=jnp.float32)  # nn.init.normal_
    bias = jnp.zeros((C_out,), dtype=jnp.float32)                                    # nn.init.zeros_

    y = ws_conv2d(x, weight, bias, stride=1, padding=0)
    jax.block_until_ready(y)

    # Reference: conv2d(x*scale) + bias, computed in f32 by XLA.
    scale = (2.0 / (C_in * ksize * ksize)) ** 0.5
    y_ref = jax.lax.conv_general_dilated(
        x * scale, weight, window_strides=(1, 1), padding="VALID",
        dimension_numbers=("NCHW", "OIHW", "NCHW"),
    ) + bias.reshape(1, C_out, 1, 1)

    assert y.shape == (B, C_out, H - ksize + 1, W - ksize + 1), y.shape
    # bf16 MXU operands (f32 accumulation) vs f32 reference -> relaxed tolerance.
    err = float(jnp.max(jnp.abs(y - y_ref)))
    assert jnp.allclose(y, y_ref, atol=5e-2, rtol=5e-2), f"max abs err {err}"

    print("KERNEL_OK")
</pallas_src>

<mosaic_0001>
module attributes {stable_mosaic.version = 11 : i64} {
  func.func @kernel(%arg0: i32, %arg1: memref<1x304x128xbf16, #tpu.memory_space<vmem>>, %arg2: memref<9x128x128xbf16, #tpu.memory_space<vmem>>, %arg3: memref<1x128xf32, #tpu.memory_space<vmem>>, %arg4: memref<1x256x128xf32, #tpu.memory_space<vmem>>) attributes {dimension_semantics = [#tpu.dimension_semantics<parallel>], iteration_bounds = array<i64: 2>, scalar_prefetch = 0 : i64, scratch_operands = 0 : i64, tpu.core_type = #tpu.core_type<tc>, window_params = [{transform_indices = @transform_0, window_bounds = array<i64: 1, 304, 128>}, {pipeline_mode = #tpu.pipeline_mode<synchronous>, transform_indices = @transform_1, window_bounds = array<i64: 9, 128, 128>}, {pipeline_mode = #tpu.pipeline_mode<synchronous>, transform_indices = @transform_2, window_bounds = array<i64: 1, 128>}, {transform_indices = @transform_3, window_bounds = array<i64: 1, 256, 128>}]} {
    %c0 = arith.constant 0 : index
    %c0_0 = arith.constant 0 : index
    %c0_1 = arith.constant 0 : index
    %0 = vector.load %arg1[%c0, %c0_0, %c0_1] : memref<1x304x128xbf16, #tpu.memory_space<vmem>>, vector<1x256x128xbf16>
    %1 = vector.shape_cast %0 : vector<1x256x128xbf16> to vector<256x128xbf16>
    %c0_2 = arith.constant 0 : index
    %c0_3 = arith.constant 0 : index
    %c0_4 = arith.constant 0 : index
    %2 = vector.load %arg2[%c0_2, %c0_3, %c0_4] : memref<9x128x128xbf16, #tpu.memory_space<vmem>>, vector<1x128x128xbf16>
    %3 = vector.shape_cast %2 : vector<1x128x128xbf16> to vector<128x128xbf16>
    %cst = arith.constant dense<0.000000e+00> : vector<256x128xf32>
    %4 = tpu.matmul %1, %3, %cst {dimension_numbers = #tpu.dot_dimension_numbers<[1], [0], [0], [1], [0, 0, 1, 1], [], []>} : vector<256x128xbf16>, vector<128x128xbf16>, vector<256x128xf32> -> vector<256x128xf32>
    %c0_5 = arith.constant 0 : index
    %c1 = arith.constant 1 : index
    %c0_6 = arith.constant 0 : index
    %5 = vector.load %arg1[%c0_5, %c1, %c0_6] : memref<1x304x128xbf16, #tpu.memory_space<vmem>>, vector<1x256x128xbf16>
    %6 = vector.shape_cast %5 : vector<1x256x128xbf16> to vector<256x128xbf16>
    %c1_7 = arith.constant 1 : index
    %c0_8 = arith.constant 0 : index
    %c0_9 = arith.constant 0 : index
    %7 = vector.load %arg2[%c1_7, %c0_8, %c0_9] : memref<9x128x128xbf16, #tpu.memory_space<vmem>>, vector<1x128x128xbf16>
    %8 = vector.shape_cast %7 : vector<1x128x128xbf16> to vector<128x128xbf16>
    %cst_10 = arith.constant dense<0.000000e+00> : vector<256x128xf32>
    %9 = tpu.matmul %6, %8, %cst_10 {dimension_numbers = #tpu.dot_dimension_numbers<[1], [0], [0], [1], [0, 0, 1, 1], [], []>} : vector<256x128xbf16>, vector<128x128xbf16>, vector<256x128xf32> -> vector<256x128xf32>
    %10 = arith.addf %4, %9 : vector<256x128xf32>
    %c0_11 = arith.constant 0 : index
    %c2 = arith.constant 2 : index
    %c0_12 = arith.constant 0 : index
    %11 = vector.load %arg1[%c0_11, %c2, %c0_12] : memref<1x304x128xbf16, #tpu.memory_space<vmem>>, vector<1x256x128xbf16>
    %12 = vector.shape_cast %11 : vector<1x256x128xbf16> to vector<256x128xbf16>
    %c2_13 = arith.constant 2 : index
    %c0_14 = arith.constant 0 : index
    %c0_15 = arith.constant 0 : index
    %13 = vector.load %arg2[%c2_13, %c0_14, %c0_15] : memref<9x128x128xbf16, #tpu.memory_space<vmem>>, vector<1x128x128xbf16>
    %14 = vector.shape_cast %13 : vector<1x128x128xbf16> to vector<128x128xbf16>
    %cst_16 = arith.constant dense<0.000000e+00> : vector<256x128xf32>
    %15 = tpu.matmul %12, %14, %cst_16 {dimension_numbers = #tpu.dot_dimension_numbers<[1], [0], [0], [1], [0, 0, 1, 1], [], []>} : vector<256x128xbf16>, vector<128x128xbf16>, vector<256x128xf32> -> vector<256x128xf32>
    %16 = arith.addf %10, %15 : vector<256x128xf32>
    %c0_17 = arith.constant 0 : index
    %c16 = arith.constant 16 : index
    %c0_18 = arith.constant 0 : index
    %17 = vector.load %arg1[%c0_17, %c16, %c0_18] : memref<1x304x128xbf16, #tpu.memory_space<vmem>>, vector<1x256x128xbf16>
    %18 = vector.shape_cast %17 : vector<1x256x128xbf16> to vector<256x128xbf16>
    %c3 = arith.constant 3 : index
    %c0_19 = arith.constant 0 : index
    %c0_20 = arith.constant 0 : index
    %19 = vector.load %arg2[%c3, %c0_19, %c0_20] : memref<9x128x128xbf16, #tpu.memory_space<vmem>>, vector<1x128x128xbf16>
    %20 = vector.shape_cast %19 : vector<1x128x128xbf16> to vector<128x128xbf16>
    %cst_21 = arith.constant dense<0.000000e+00> : vector<256x128xf32>
    %21 = tpu.matmul %18, %20, %cst_21 {dimension_numbers = #tpu.dot_dimension_numbers<[1], [0], [0], [1], [0, 0, 1, 1], [], []>} : vector<256x128xbf16>, vector<128x128xbf16>, vector<256x128xf32> -> vector<256x128xf32>
    %22 = arith.addf %16, %21 : vector<256x128xf32>
    %c0_22 = arith.constant 0 : index
    %c17 = arith.constant 17 : index
    %c0_23 = arith.constant 0 : index
    %23 = vector.load %arg1[%c0_22, %c17, %c0_23] : memref<1x304x128xbf16, #tpu.memory_space<vmem>>, vector<1x256x128xbf16>
    %24 = vector.shape_cast %23 : vector<1x256x128xbf16> to vector<256x128xbf16>
    %c4 = arith.constant 4 : index
    %c0_24 = arith.constant 0 : index
    %c0_25 = arith.constant 0 : index
    %25 = vector.load %arg2[%c4, %c0_24, %c0_25] : memref<9x128x128xbf16, #tpu.memory_space<vmem>>, vector<1x128x128xbf16>
    %26 = vector.shape_cast %25 : vector<1x128x128xbf16> to vector<128x128xbf16>
    %cst_26 = arith.constant dense<0.000000e+00> : vector<256x128xf32>
    %27 = tpu.matmul %24, %26, %cst_26 {dimension_numbers = #tpu.dot_dimension_numbers<[1], [0], [0], [1], [0, 0, 1, 1], [], []>} : vector<256x128xbf16>, vector<128x128xbf16>, vector<256x128xf32> -> vector<256x128xf32>
    %28 = arith.addf %22, %27 : vector<256x128xf32>
    %c0_27 = arith.constant 0 : index
    %c18 = arith.constant 18 : index
    %c0_28 = arith.constant 0 : index
    %29 = vector.load %arg1[%c0_27, %c18, %c0_28] : memref<1x304x128xbf16, #tpu.memory_space<vmem>>, vector<1x256x128xbf16>
    %30 = vector.shape_cast %29 : vector<1x256x128xbf16> to vector<256x128xbf16>
    %c5 = arith.constant 5 : index
    %c0_29 = arith.constant 0 : index
    %c0_30 = arith.constant 0 : index
    %31 = vector.load %arg2[%c5, %c0_29, %c0_30] : memref<9x128x128xbf16, #tpu.memory_space<vmem>>, vector<1x128x128xbf16>
    %32 = vector.shape_cast %31 : vector<1x128x128xbf16> to vector<128x128xbf16>
    %cst_31 = arith.constant dense<0.000000e+00> : vector<256x128xf32>
    %33 = tpu.matmul %30, %32, %cst_31 {dimension_numbers = #tpu.dot_dimension_numbers<[1], [0], [0], [1], [0, 0, 1, 1], [], []>} : vector<256x128xbf16>, vector<128x128xbf16>, vector<256x128xf32> -> vector<256x128xf32>
    %34 = arith.addf %28, %33 : vector<256x128xf32>
    %c0_32 = arith.constant 0 : index
    %c32 = arith.constant 32 : index
    %c0_33 = arith.constant 0 : index
    %35 = vector.load %arg1[%c0_32, %c32, %c0_33] : memref<1x304x128xbf16, #tpu.memory_space<vmem>>, vector<1x256x128xbf16>
    %36 = vector.shape_cast %35 : vector<1x256x128xbf16> to vector<256x128xbf16>
    %c6 = arith.constant 6 : index
    %c0_34 = arith.constant 0 : index
    %c0_35 = arith.constant 0 : index
    %37 = vector.load %arg2[%c6, %c0_34, %c0_35] : memref<9x128x128xbf16, #tpu.memory_space<vmem>>, vector<1x128x128xbf16>
    %38 = vector.shape_cast %37 : vector<1x128x128xbf16> to vector<128x128xbf16>
    %cst_36 = arith.constant dense<0.000000e+00> : vector<256x128xf32>
    %39 = tpu.matmul %36, %38, %cst_36 {dimension_numbers = #tpu.dot_dimension_numbers<[1], [0], [0], [1], [0, 0, 1, 1], [], []>} : vector<256x128xbf16>, vector<128x128xbf16>, vector<256x128xf32> -> vector<256x128xf32>
    %40 = arith.addf %34, %39 : vector<256x128xf32>
    %c0_37 = arith.constant 0 : index
    %c33 = arith.constant 33 : index
    %c0_38 = arith.constant 0 : index
    %41 = vector.load %arg1[%c0_37, %c33, %c0_38] : memref<1x304x128xbf16, #tpu.memory_space<vmem>>, vector<1x256x128xbf16>
    %42 = vector.shape_cast %41 : vector<1x256x128xbf16> to vector<256x128xbf16>
    %c7 = arith.constant 7 : index
    %c0_39 = arith.constant 0 : index
    %c0_40 = arith.constant 0 : index
    %43 = vector.load %arg2[%c7, %c0_39, %c0_40] : memref<9x128x128xbf16, #tpu.memory_space<vmem>>, vector<1x128x128xbf16>
    %44 = vector.shape_cast %43 : vector<1x128x128xbf16> to vector<128x128xbf16>
    %cst_41 = arith.constant dense<0.000000e+00> : vector<256x128xf32>
    %45 = tpu.matmul %42, %44, %cst_41 {dimension_numbers = #tpu.dot_dimension_numbers<[1], [0], [0], [1], [0, 0, 1, 1], [], []>} : vector<256x128xbf16>, vector<128x128xbf16>, vector<256x128xf32> -> vector<256x128xf32>
    %46 = arith.addf %40, %45 : vector<256x128xf32>
    %c0_42 = arith.constant 0 : index
    %c34 = arith.constant 34 : index
    %c0_43 = arith.constant 0 : index
    %47 = vector.load %arg1[%c0_42, %c34, %c0_43] : memref<1x304x128xbf16, #tpu.memory_space<vmem>>, vector<1x256x128xbf16>
    %48 = vector.shape_cast %47 : vector<1x256x128xbf16> to vector<256x128xbf16>
    %c8 = arith.constant 8 : index
    %c0_44 = arith.constant 0 : index
    %c0_45 = arith.constant 0 : index
    %49 = vector.load %arg2[%c8, %c0_44, %c0_45] : memref<9x128x128xbf16, #tpu.memory_space<vmem>>, vector<1x128x128xbf16>
    %50 = vector.shape_cast %49 : vector<1x128x128xbf16> to vector<128x128xbf16>
    %cst_46 = arith.constant dense<0.000000e+00> : vector<256x128xf32>
    %51 = tpu.matmul %48, %50, %cst_46 {dimension_numbers = #tpu.dot_dimension_numbers<[1], [0], [0], [1], [0, 0, 1, 1], [], []>} : vector<256x128xbf16>, vector<128x128xbf16>, vector<256x128xf32> -> vector<256x128xf32>
    %52 = arith.addf %46, %51 : vector<256x128xf32>
    %c0_47 = arith.constant 0 : index
    %c0_48 = arith.constant 0 : index
    %53 = vector.load %arg3[%c0_47, %c0_48] : memref<1x128xf32, #tpu.memory_space<vmem>>, vector<1x128xf32>
    %54 = vector.broadcast %53 : vector<1x128xf32> to vector<256x128xf32>
    %55 = arith.addf %52, %54 : vector<256x128xf32>
    %c0_49 = arith.constant 0 : index
    %c0_50 = arith.constant 0 : index
    %c0_51 = arith.constant 0 : index
    %56 = vector.load %arg4[%c0_49, %c0_50, %c0_51] : memref<1x256x128xf32, #tpu.memory_space<vmem>>, vector<1x256x128xf32>
    %57 = vector.shape_cast %56 : vector<1x256x128xf32> to vector<256x128xf32>
    %58 = vector.shape_cast %55 : vector<256x128xf32> to vector<1x256x128xf32>
    tpu.vector_store %arg4[%c0_49, %c0_50, %c0_51], %58 {strides = array<i32>} : memref<1x256x128xf32, #tpu.memory_space<vmem>>, vector<1x256x128xf32>,
    return
  }
  func.func @transform_0(%arg0: i32) -> (i32, i32, i32) {
    %c0_i32 = arith.constant 0 : i32
    %c0_i32_0 = arith.constant 0 : i32
    %c0_i32_1 = arith.constant 0 : i32
    return %arg0, %c0_i32, %c0_i32_0 : i32, i32, i32
  }
  func.func @transform_1(%arg0: i32) -> (i32, i32, i32) {
    %c0_i32 = arith.constant 0 : i32
    %c0_i32_0 = arith.constant 0 : i32
    %c0_i32_1 = arith.constant 0 : i32
    %c0_i32_2 = arith.constant 0 : i32
    return %c0_i32, %c0_i32_0, %c0_i32_1 : i32, i32, i32
  }
  func.func @transform_2(%arg0: i32) -> (i32, i32) {
    %c0_i32 = arith.constant 0 : i32
    %c0_i32_0 = arith.constant 0 : i32
    %c0_i32_1 = arith.constant 0 : i32
    return %c0_i32, %c0_i32_0 : i32, i32
  }
  func.func @transform_3(%arg0: i32) -> (i32, i32, i32) {
    %c0_i32 = arith.constant 0 : i32
    %c0_i32_0 = arith.constant 0 : i32
    %c0_i32_1 = arith.constant 0 : i32
    return %arg0, %c0_i32, %c0_i32_0 : i32, i32, i32
  }
}

</mosaic_0001>

<bundles_post_ra>
// kernel: tpu_custom_call.1
= control target key start
LH: loop header
LB: loop body
LE: loop exit
PB: predicated region body
PF: predicated region fallthrough
CT: control target
= control target key end

     0   :  { %8 = vsyncpa [#allocation3], 0  ;;  %s6132_s0 = inlined_call_operand.hbm [shape: bf16[2,304,128], index: 0, kind: input, shape index: {}]   ;;  %s6133_s1 = inlined_call_operand.hbm [shape: bf16[9,128,128], index: 1, kind: input, shape index: {}]   ;;  %s6134_s2 = inlined_call_operand.vmem [shape: f32[1,128], index: 2, kind: input, shape index: {}]   ;;  %s6135_s3 = inlined_call_operand.hbm [shape: f32[2,256,128], index: 3, kind: output, shape index: {}]  }
   0x1   :  { %10 = vsyncpa [#allocation3 + $0x1], 0 }
   0x2   :  { %11 = vsyncpa [#allocation6], 0 }
   0x3   :  { %12 = vsyncpa [#allocation4], 0 }
   0x4   :  { %14 = vsyncpa [#allocation4 + $0x1], 0  ;;  %s5361_s12 = smov 0   ;;  %s5363_s13 = smov 0  }
   0x5   :  { %s5365_s14 = smov 0   ;;  %s5367_s15 = smov 0  }
   0x6 LB: > { %s5382_s16 = sadd.s32 4294967295, %s5332_s15   ;;  %s3855_s17 = sadd.s32 4294967294, %s5332_s15   ;;  %s5332_s15 = sphi %s5367_s15, %s6155_s15   ;;  %s5328_s14 = sphi %s5365_s14, %s6154_s14   ;;  %s5324_s13 = sphi %s5363_s13, %s6153_s13   ;;  %s5320_s12 = sphi %s5361_s12, %s6152_s12  }
   0x7   : > { %p40_p0 = scmp.ne.s32.totalorder %s5324_s13, %s5320_s12  ;;  %p6136_p1 = scmp.eq.s32.totalorder %s5382_s16, 0 }
   0x8   : > { %p112_p3 = scmp.eq.s32.totalorder %s3855_s17, 1  ;;  %p3856_p5 = scmp.ge.s32.totalorder %s5332_s15, 1 }
   0x9   : > { %p5391_p4 = por %p6136_p1, %p40_p0  ;;  %p119_p7 = scmp.lt.s32.totalorder %s5332_s15, 3 }
   0xa   : > { %p5396_p6 = por %p112_p3, %p40_p0  ;;  %s5334_s21 = smov [#allocation5]  }
   0xb   : > { %s6139_s18 = scalar_select %p5391_p4, 1, 0 }
   0xc   : > { %s6140_s19 = scalar_select %p5396_p6, 1, 0 }
   0xd   : > { %p5401_p8 = pnand %p3856_p5, %p119_p7  ;;  %s131_s22 = sshll.u32 %s5334_s21, 4  ;;  %s5405_s22 = int_to_ptr.vmem [resolvable:$true] %s131_s22 }
   0xe   : > { %s5417_s24 = sadd.s32 1, %s5332_s15   ;;  %s27_s25 = sadd.s32 1, %s5328_s14 }
   0xf   : > { %s6141_s20 = scalar_select %p5401_p8, 1, 0 }
  0x10   : > { %p4959_p9 = pneg %p5401_p8  ;;  %s24_s26 = ssub.s32 %s5332_s15, %s5417_s24 }
  0x11   : > { %s5204_s29 = scalar_lea.hbm %s6133_s1, 9216 }
  0x12   : > { %p5412_p11 = pnand %p4959_p9, %p6136_p1  ;;  %p5205_p12 = scmp.ne.s32.totalorder %s6133_s1, %s5204_s29 }
  0x13   : > { %p5211_p5 = scmp.lt.u32.totalorder %s5204_s29, %s6133_s1 }
  0x14   : > { %p5206_p13 = pneg %p5412_p11 }
  0x16   : > { %p5207_p0 = pnand %p5206_p13, %p5205_p12 }
  0x18   : > { %p5208_p3 = pneg %p5207_p0 }
  0x1a   : > { %p5213_p7 = pnand %p5211_p5, %p5208_p3 }
  0x1c   : > { %5216 = shalt.err (!%p5213_p7)
}
  0x1d   : > { %s5217_s7 = scalar_lea.vmem %s5405_s22, 9216  ;;  %p5225_p2 = scmp.lt.s32.totalorder %s5405_s22, %s5405_s22 }
  0x1e   : > { %p5218_p9 = scmp.ne.s32.totalorder %s5405_s22, %s5217_s7  ;;  %p5226_p6 = scmp.lt.s32.totalorder %s5217_s7, %s5217_s7 }
  0x20   : > { %p5220_p10 = pnand %p5218_p9, %p5206_p13  ;;  %p5227_p4 = por %p5226_p6, %p5225_p2 }
  0x22   : > { %p5221_p1 = pneg %p5220_p10 }
  0x24   : > { %p5228_p8 = pnand %p5227_p4, %p5221_p1 }
  0x26   : > { %5231 = shalt.err (!%p5228_p8)
}
  0x27   : > { %s5335_s8 = smov 64   ;;  %s5336_s9 = smov 4  }
  0x28   : > { %4962 = dma.hbm_to_vmem [thread:$0]  (!%p5412_p11), %s6133_s1, 9216, %s5405_s22, [#allocation6], %s5335_s8, %s5335_s8, %s5336_s9  }
  0x29   : > { %p25_p1 = scmp.eq.s32.totalorder %s24_s26, 0  ;;  %p34_p2 = scmp.ne.s32.totalorder %s5328_s14, %s5324_s13 }
  0x2a   : > { %p35_p4 = scmp.eq.s32.totalorder %s5332_s15, 0  ;;  %p4972_p6 = scmp.lt.s32.totalorder %s5332_s15, 2 }
  0x2b   : > { %s5451_s17 = scalar_select %p25_p1, %s5328_s14, %s27_s25  }
  0x2c   : > { %p36_p8 = por %p35_p4, %p34_p2  ;;  %p6143_p10 = scmp.eq.s32.totalorder %s5382_s16, 1 }
  0x2d   : > { %s148_s23 = sand.u32 1, %s5328_s14   ;;  %s4949_s27 = smul.u32 2432, %s5332_s15 }
  0x2e   : > { %p5455_p12 = por %p6143_p10, %p34_p2  ;;  %s4948_s28 = smul.u32 152, %s148_s23 }
  0x2f   : > { %p5461_p13 = pnand %p4972_p6, %p36_p8  ;;  %s5468_s25 = scalar_lea.hbm %s6132_s0, %s4949_s27 }
  0x30   : > { %s152_s30 = scalar_lea.vmem [#allocation2], %s4948_s28  ;;  %s5472_s5 = scalar_lea.sflag [#allocation3], %s148_s23 }
  0x31   : > { %s159_s4 = sshll.u32 %s152_s30, 4  ;;  %s5232_s6 = scalar_lea.hbm %s5468_s25, 2432  ;;  %s5470_s4 = int_to_ptr.vmem [resolvable:$true] %s159_s4 }
  0x32   : > { %p5233_p11 = scmp.ne.s32.totalorder %s5468_s25, %s5232_s6  ;;  %p5234_p0 = pneg %p5461_p13 }
  0x33   : > { %s5237_s11 = scalar_lea.hbm %s6132_s0, 4864  ;;  %p5238_p7 = scmp.lt.u32.totalorder %s5468_s25, %s6132_s0 }
  0x34   : > { %p5235_p3 = pnand %p5234_p0, %p5233_p11  ;;  %p5239_p9 = scmp.lt.u32.totalorder %s5237_s11, %s5232_s6 }
  0x35   : > { %p5241_p2 = scmp.lt.u32.totalorder %s5232_s6, %s5468_s25 }
  0x36   : > { %p5236_p5 = pneg %p5235_p3  ;;  %p5240_p1 = por %p5239_p9, %p5238_p7 }
  0x38   : > { %p5242_p4 = por %p5241_p2, %p5240_p1 }
  0x3a   : > { %p5243_p6 = pnand %p5242_p4, %p5236_p5 }
  0x3c   : > { %5246 = shalt.err (!%p5243_p6)
}
  0x3d   : > { %s5247_s23 = scalar_lea.vmem %s5470_s4, 2432  ;;  %s5337_s28 = smov [#allocation2]  }
  0x3e   : > { %p5248_p8 = scmp.ne.s32.totalorder %s5470_s4, %s5247_s23  ;;  %s5252_s26 = sshll.u32 %s5337_s28, 4  ;;  %s5253_s26 = int_to_ptr.vmem [resolvable:$false] %s5252_s26 }
  0x3f   : > { %s5254_s30 = scalar_lea.vmem %s5253_s26, 4864  ;;  %p5255_p3 = scmp.lt.s32.totalorder %s5470_s4, %s5253_s26 }
  0x40   : > { %p5250_p10 = pnand %p5248_p8, %p5234_p0  ;;  %p5256_p7 = scmp.lt.s32.totalorder %s5254_s30, %s5247_s23 }
  0x42   : > { %p5251_p11 = pneg %p5250_p10  ;;  %p5257_p9 = por %p5256_p7, %p5255_p3 }
  0x44   : > { %p5258_p1 = pnand %p5257_p9, %p5251_p11 }
  0x46   : > { %5261 = shalt.err (!%p5258_p1)
}
  0x47   : > { %4966 = dma.hbm_to_vmem [thread:$0]  (!%p5461_p13), %s5468_s25, 2432, %s5470_s4, %s5472_s5, %s5335_s8, %s5335_s8, %s5336_s9  }
  0x48   : > { %p6146_p0 = scmp.ne.s32.totalorder %s6141_s20, 0 }
  0x49   : > { %s5506_s6 = sand.u32 (!%p6146_p0), 1, %s5324_s13   ;;  %p6147_p5 = scmp.ne.s32.totalorder (!%p6146_p0), %s6139_s18, 0 }
  0x4a   : > { %171 = sbr.rel (%p6146_p0) target bundleno = 633 (0x279), region = 32  ;;  %s174_s10 = scalar_lea.sflag (!%p6146_p0), [#allocation3], %s5506_s6 }
  0x4b   : > { %s4950_s7 = smul.u32 (!%p6146_p0), 152, %s5506_s6 }
  0x4d   : > { %s5510_s11 = scalar_lea.vmem (!%p6146_p0), [#allocation2], %s4950_s7 }
  0x51   : > { %5307 = dma.done.wait (%p6147_p5), %s174_s10, 2432  }
  0x52   : > { %5309 = vsyncadd (%p6147_p5), %s174_s10, 4294964864  ;;  %p6148_p13 = scmp.eq.s32.totalorder %s5382_s16, 0 }
  0x54   : > { %5311 = dma.done.wait (%p6148_p13), [#allocation6], 9216   ;;  %p6149_p2 = pmov %p6148_p13 }
  0x55   : > { %v5012_v0 = vld [vmem:[#allocation5 + $0x40] sm:$0xff]   ;;  %v5014_v2 = vld [vmem:[#allocation5 + $0x48] sm:$0xff]   ;;  %v5016_v4 = vld [vmem:[#allocation5 + $0x50] sm:$0xff]   ;;  %vm354_vm0 = vsmask.f32 7424  ;;  %vm958_vm1 = vcmask 1046528  }
  0x56   : > { %5313 = vsyncadd (%p6149_p2), [#allocation6], 4294958080  ;;  %v5013_v1 = vld [vmem:[#allocation5 + $0x100] sm:$0xff]   ;;  %4244 = vmatprep.subr.bf16.mxu1 %v5012_v0  ;;  %v5015_v3 = vld [vmem:[#allocation5 + $0x108] sm:$0xff]   ;;  %s3862_s18 = sshll.u32 %s5506_s6, 8  ;;  %s4027_s29 = sshll.u32 %s5382_s16, 12 }
  0x57   : > { %4436 = vmatprep.subr.bf16.mxu0 %v5013_v1  ;;  %4245 = vmatpush3.bf16.msra.mxu1 %v5012_v0  ;;  %v5017_v5 = vld [vmem:[#allocation5 + $0x110] sm:$0xff]   ;;  %v5018_v6 = vld [vmem:[#allocation5 + $0x58] sm:$0xff]   ;;  %v5020_v8 = vld [vmem:[#allocation5 + $0x60] sm:$0xff]   ;;  %s6017_s9 = scalar_lea.vmem [#allocation7], %s3862_s18  ;;  %s6082_s27 = scalar_lea.hbm %s6135_s3, %s4027_s29 }
  0x58   : > { %4437 = vmatpush3.bf16.msra.mxu0 %v5013_v1  ;;  %4246 = vmatprep.subr.bf16.mxu1 %v5014_v2  ;;  %v5019_v7 = vld [vmem:[#allocation5 + $0x118] sm:$0xff]   ;;  %v5021_v9 = vld [vmem:[#allocation5 + $0x120] sm:$0xff]   ;;  %v5022_v10 = vld [vmem:[#allocation5 + $0x68] sm:$0xff]   ;;  %s3772_s25 = sshll.u32 %s6017_s9, 4  ;;  %s3759_s16 = scalar_lea.sflag [#allocation4], %s5506_s6  ;;  %s6084_s25 = int_to_ptr.vmem [resolvable:$true] %s3772_s25 }
  0x59   : > { %4438 = vmatprep.subr.bf16.mxu0 %v5015_v3  ;;  %v5023_v11 = vld [vmem:[#allocation5 + $0x128] sm:$0xff]   ;;  %v5525_v15 = vld [vmem:[%s5510_s11 + $0x8] sm:$0xff]   ;;  %v5536_v24 = vld [vmem:[%s5510_s11 + $0x10] sm:$0xff]   ;;  %s5262_s22 = scalar_lea.vmem %s6084_s25, 4096  ;;  %s5338_s23 = smov [#allocation7]  }
  0x5a   : > { %v205_v12 = vld [vmem:[%s5510_s11] sm:$0xf]  ;;  %v206_v13 = vld [vmem:[%s5510_s11 + $0x4] sm:$0xf]  ;;  %v1635_v16 = vld [vmem:[%s5510_s11 + $0x8] sm:$0xf]  ;;  %p5263_p4 = scmp.ne.s32.totalorder %s6084_s25, %s5262_s22 }
  0x5b   : > { %4247 = vmatpush3.bf16.msra.mxu1 %v5014_v2  ;;  %v5522_v14 = vcombine.low %v205_v12, %v206_v13  ;;  %v5024_v17 = vld [vmem:[#allocation5 + $0x70] sm:$0xff]   ;;  %v363_v22 = vshll.u32 %v5525_v15, 16  ;;  %v5539_v25 = vld [vmem:[%s5510_s11 + $0x10] sm:$0xff]   ;;  %v1776_v31 = vshll.u32 %v5536_v24, 16  ;;  %v5544_v33 = vld [vmem:[%s5510_s11 + $0x18] sm:$0xff]   ;;  %v367_v36 = vshrl.u32 %v5525_v15, 16 }
  0x5c   : > { %4439 = vmatpush3.bf16.msra.mxu0 %v5015_v3  ;;  %4248 = vmatprep.subr.bf16.mxu1 %v5016_v4  ;;  %v5529_v18 = vld [vmem:[%s5510_s11 + $0xc] sm:$0xf]  ;;  %v371_v32 = vshll.u32 %v5539_v25, 16  ;;  %v1780_v39 = vshrl.u32 %v5536_v24, 16  ;;  %v1784_v40 = vshll.u32 %v5544_v33, 16  ;;  %v375_v44 = vshrl.u32 %v5539_v25, 16  ;;  %p5264_p6 = pnand %p5263_p4, %p5455_p12 }
  0x5d   : > { %4440 = vmatprep.subr.bf16.mxu0 %v5017_v5  ;;  %v5025_v19 = vld [vmem:[#allocation5 + $0x130] sm:$0xff]   ;;  %v356_v20 = vshrl.u32 %v5522_v14, 16  ;;  %v358_v21 = vshll.u32 %v5522_v14, 16  ;;  %v3929_v23 = vcombine.low %v1635_v16, %v5529_v18  ;;  %v365_v27 = vrot.slane %v363_v22, 1  ;;  %v5026_v30 = vld [vmem:[#allocation5 + $0x78] sm:$0xff]   ;;  %v5033_v45 = vld [vmem:[#allocation5] sm:$0xff]  }
  0x5e   : > { %v5027_v37 = vld [vmem:[#allocation5 + $0x138] sm:$0xff]   ;;  %v1778_v38 = vrot.slane %v1776_v31, 1  ;;  %v373_v43 = vrot.slane %v371_v32, 1  ;;  %v1786_v46 = vrot.slane %v1784_v40, 1  ;;  %v5552_v47 = vld [vmem:[%s5510_s11 + $0x18] sm:$0xff]   ;;  %v5556_v50 = vld [vmem:[%s5510_s11 + $0x20] sm:$0xff]   ;;  %p5265_p8 = pneg %p5264_p6 }
  0x5f   : > { %4249 = vmatpush3.bf16.msra.mxu1 %v5016_v4  ;;  %v360_v26 = vrot.slane %v358_v21, 1  ;;  %v1769_v28 = vshrl.u32 %v3929_v23, 16  ;;  %v1771_v29 = vshll.u32 %v3929_v23, 16  ;;  %v369_v49 = vor.u32 %v367_v36, %v365_v27  ;;  %v5561_v54 = vld [vmem:[%s5510_s11 + $0x20] sm:$0xff]   ;;  %v5035_v55 = vld [vmem:[#allocation5 + $0x140] sm:$0xff]   ;;  %v5566_v61 = vld [vmem:[%s5510_s11 + $0x28] sm:$0xff]  }
  0x60   : > { %4441 = vmatpush3.bf16.msra.mxu0 %v5017_v5  ;;  %4250 = vmatprep.subr.bf16.mxu1 %v5018_v6  ;;  %v1788_v51 = vshrl.u32 %v5544_v33, 16  ;;  %v1782_v52 = vor.u32 %v1780_v39, %v1778_v38  ;;  %v379_v53 = vshll.u32 %v5552_v47, 16  ;;  %v377_v56 = vor.u32 %v375_v44, %v373_v43  ;;  %v5036_v63 = vld [vmem:[#allocation5 + $0x148] sm:$0xff]   ;;  %v5580_v12 = vld [vmem:[%s5510_s11 + $0x30] sm:$0xff]   ;;  %v5042_v23 = vld [vmem:[#allocation5 + $0x150] sm:$0xff]   ;;  %s5266_s28 = sshll.u32 %s5338_s23, 4  ;;  %s5267_s28 = int_to_ptr.vmem [resolvable:$false] %s5266_s28 }
  0x61   : > { %4442 = vmatprep.subr.bf16.mxu0 %v5019_v7  ;;  %v361_v34 = vor.u32 %v360_v26, %v356_v20  ;;  %v1773_v35 = vrot.slane %v1771_v29, 1  ;;  %v1792_v57 = vshll.u32 %v5556_v50, 16  ;;  %v387_v60 = vshll.u32 %v5561_v54, 16  ;;  %v5040_v4 = vld [vmem:[#allocation5 + $0x8] sm:$0xff]   ;;  %s5268_s26 = scalar_lea.vmem %s5267_s28, 8192  ;;  %p5269_p10 = scmp.lt.s32.totalorder %s6084_s25, %s5267_s28 }
  0x62   : > { %v381_v58 = vrot.slane %v379_v53, 1  ;;  %v1790_v59 = vor.u32 %v1788_v51, %v1786_v46  ;;  %v374_v62 = vsel %vm354_vm0, %v369_v49, %v373_v43  ;;  %v383_v1 = vshrl.u32 %v5552_v47, 16  ;;  %v5590_v31 = vld [vmem:[%s5510_s11 + $0x38] sm:$0xff]   ;;  %p5270_p11 = scmp.lt.s32.totalorder %s5268_s26, %s5262_s22 }
  0x63   : > { %4251 = vmatpush3.bf16.msra.mxu1 %v5018_v6  ;;  %v366_v41 = vsel %vm354_vm0, %v361_v34, %v365_v27  ;;  %v1774_v42 = vor.u32 %v1773_v35, %v1769_v28  ;;  %v1794_v0 = vrot.slane %v1792_v57, 1  ;;  %v1787_v2 = vsel %vm354_vm0, %v1782_v52, %v1786_v46  ;;  %v5043_v34 = vld [vmem:[#allocation5 + $0x158] sm:$0xff]   ;;  %v5601_v44 = vld [vmem:[%s5510_s11 + $0x38] sm:$0xff]  }
  0x64   : > { %4443 = vmatpush3.bf16.msra.mxu0 %v5019_v7  ;;  %4252 = vmatprep.subr.bf16.mxu1 %v5020_v8  ;;  %v389_v3 = vrot.slane %v387_v60, 1  ;;  %v1796_v5 = vshrl.u32 %v5556_v50, 16  ;;  %v1800_v6 = vshll.u32 %v5566_v61, 16  ;;  %v382_v7 = vsel %vm354_vm0, %v377_v56, %v381_v58  ;;  %v5049_v46 = vld [vmem:[#allocation5 + $0x160] sm:$0xff]   ;;  %v5054_v56 = vld [vmem:[#allocation5 + $0x18] sm:$0xff]   ;;  %p5271_p3 = por %p5270_p11, %p5269_p10 }
  0x65   : > { %4444 = vmatprep.subr.bf16.mxu0 %v5021_v9  ;;  %4260 = vmatprep.mubr.bf16.mxu1 %v366_v41  ;;  %v1779_v48 = vsel %vm354_vm0, %v1774_v42, %v1778_v38  ;;  %v385_v13 = vor.u32 %v383_v1, %v381_v58  ;;  %v1804_v16 = vshrl.u32 %v5566_v61, 16  ;;  %v1808_v22 = vshll.u32 %v5580_v12, 16 }
  0x66   : > { %4452 = vmatprep.mubr.bf16.mxu0 %v1779_v48  ;;  %v1812_v38 = vshrl.u32 %v5580_v12, 16  ;;  %v1816_v39 = vshll.u32 %v5590_v31, 16  ;;  %v5604_v48 = vld [vmem:[%s5510_s11 + $0x40] sm:$0xff]   ;;  %v1820_v49 = vshrl.u32 %v5590_v31, 16  ;;  %v411_v53 = vshll.u32 %v5601_v44, 16  ;;  %p5272_p7 = pnand %p5271_p3, %p5265_p8 }
  0x67   : > { %4253 = vmatpush3.bf16.msra.mxu1 %v5020_v8  ;;  %v1795_v8 = vsel %vm354_vm0, %v1790_v59, %v1794_v0  ;;  %v1810_v29 = vrot.slane %v1808_v22, 1  ;;  %v390_v32 = vsel %vm354_vm0, %v385_v13, %v389_v3  ;;  %v1824_v58 = vshll.u32 %v5604_v48, 16  ;;  %v5613_v59 = vld [vmem:[%s5510_s11 + $0x48] sm:$0xff]  }
  0x68   : > { %4445 = vmatpush3.bf16.msra.mxu0 %v5021_v9  ;;  %4254 = vmatprep.subr.bf16.mxu1 %v5022_v10  ;;  %v1802_v9 = vrot.slane %v1800_v6, 1  ;;  %v1818_v43 = vrot.slane %v1816_v39, 1  ;;  %v413_v60 = vrot.slane %v411_v53, 1  ;;  %v1832_v6 = vshll.u32 %v5613_v59, 16  ;;  %v2157_v13 = vld [vmem:[%s5510_s11 + $0x8] sm:$0xe] }
  0x69   : > { %4446 = vmatprep.subr.bf16.mxu0 %v5023_v11  ;;  %v1814_v51 = vor.u32 %v1812_v38, %v1810_v29  ;;  %v1826_v1 = vrot.slane %v1824_v58, 1  ;;  %v5057_v39 = vld [vmem:[#allocation5 + $0x178] sm:$0xff]  }
  0x6a   : > { %v1806_v26 = vor.u32 %v1804_v16, %v1802_v9  ;;  %v1822_v57 = vor.u32 %v1820_v49, %v1818_v43  ;;  %v2181_v49 = vrot.slane %v5544_v33, 1  ;;  %v5653_v53 = vld [vmem:[%s5510_s11 + $0x68] sm:$0xff]  }
  0x6b   : > { %4255 = vmatpush3.bf16.msra.mxu1 %v5022_v10  ;;  %v5576_v10 = vld [vmem:[%s5510_s11 + $0x28] sm:$0xff]  }
  0x6c   : > { %4447 = vmatpush3.bf16.msra.mxu0 %v5023_v11  ;;  %4256 = vmatprep.subr.bf16.mxu1 %v5024_v17  ;;  %v391_v11 = vshrl.u32 %v5561_v54, 16  ;;  %v395_v21 = vshll.u32 %v5576_v10, 16  ;;  %v399_v35 = vshrl.u32 %v5576_v10, 16  ;;  %v1811_v40 = vsel %vm354_vm0, %v1806_v26, %v1810_v29 }
  0x6d   : > { %4448 = vmatprep.subr.bf16.mxu0 %v5025_v19 }
  0x6e   : > { %v393_v20 = vor.u32 %v391_v11, %v389_v3  ;;  %v397_v28 = vrot.slane %v395_v21, 1  ;;  %v1819_v3 = vsel %vm354_vm0, %v1814_v51, %v1818_v43  ;;  %v5631_v21 = vld [vmem:[%s5510_s11 + $0x50] sm:$0xff]  }
  0x6f   : > { %4257 = vmatpush3.bf16.msra.mxu1 %v5024_v17  ;;  %v5584_v17 = vld [vmem:[%s5510_s11 + $0x30] sm:$0xff]  }
  0x70   : > { %4449 = vmatpush3.bf16.msra.mxu0 %v5025_v19  ;;  %4258 = vmatprep.subr.bf16.mxu1 %v5026_v30  ;;  %v1798_v19 = vor.u32 %v1796_v5, %v1794_v0  ;;  %v403_v27 = vshll.u32 %v5584_v17, 16  ;;  %v407_v42 = vshrl.u32 %v5584_v17, 16  ;;  %v5050_v0 = vld [vmem:[#allocation5 + $0x168] sm:$0xff]   ;;  %v1828_v5 = vshrl.u32 %v5604_v48, 16 }
  0x71   : > { %4450 = vmatprep.subr.bf16.mxu0 %v5027_v37 }
  0x72   : > { %v1803_v36 = vsel %vm354_vm0, %v1798_v19, %v1802_v9  ;;  %v405_v41 = vrot.slane %v403_v27, 1  ;;  %v1830_v22 = vor.u32 %v1828_v5, %v1826_v1  ;;  %v5061_v27 = vld [vmem:[#allocation5 + $0x20] sm:$0xff]  }
  0x73   : > { %4259 = vmatpush3.bf16.msra.mxu1 %v5026_v30  ;;  %v5047_v30 = vld [vmem:[#allocation5 + $0x10] sm:$0xff]   ;;  %v5665_v5 = vld [vmem:[%s5510_s11 + $0x70] sm:$0xff]  }
  0x74   : > { %4451 = vmatpush3.bf16.msra.mxu0 %v5027_v37  ;;  %4292 = vmatprep.subr.bf16.mxu1 %v5033_v45  ;;  %v398_v37 = vsel %vm354_vm0, %v393_v20, %v397_v28  ;;  %v409_v52 = vor.u32 %v407_v42, %v405_v41  ;;  %v3954_v20 = vcombine.low %v2157_v13, %v5529_v18  ;;  %v5065_v42 = vld [vmem:[#allocation5 + $0x28] sm:$0xff]   ;;  %v5073_v13 = vld [vmem:[#allocation5 + $0x38] sm:$0xff]  }
  0x75   : > { %4484 = vmatprep.subr.bf16.mxu0 %v5035_v55 }
  0x76   : > { %4261 = vmatmul.mubr.bf16.vlgmr.msra.gmra.mrb[0].mxu1 %v374_v62 }
  0x77   : > { %4453 = vmatmul.mubr.bf16.vlgmr.msra.gmra.mrb[0].mxu0 %v1787_v2  ;;  %4293 = vmatpush3.bf16.msra.mxu1 %v5033_v45  ;;  %v401_v45 = vor.u32 %v399_v35, %v397_v28  ;;  %v415_v2 = vshrl.u32 %v5601_v44, 16  ;;  %v5056_v28 = vld [vmem:[#allocation5 + $0x170] sm:$0xff]  }
  0x78   : > { %4485 = vmatpush3.bf16.msra.mxu0 %v5035_v55  ;;  %4264 = vmatprep.mubr.bf16.mxu1 %v382_v7  ;;  %v5609_v55 = vld [vmem:[%s5510_s11 + $0x40] sm:$0xff]   ;;  %v1827_v7 = vsel %vm354_vm0, %v1822_v57, %v1826_v1  ;;  %v2183_v57 = vrot.slane %v5556_v50, 1 }
  0x79   : > { %4486 = vmatprep.subr.bf16.mxu0 %v5036_v63  ;;  %4456 = vmatprep.mubr.bf16.mxu0 %v1795_v8  ;;  %v419_v62 = vshll.u32 %v5609_v55, 16  ;;  %v5624_v8 = vld [vmem:[%s5510_s11 + $0x48] sm:$0xff]   ;;  %v423_v11 = vshrl.u32 %v5609_v55, 16  ;;  %v417_v16 = vor.u32 %v415_v2, %v413_v60  ;;  %v459_v2 = vshll.u32 %v5653_v53, 16 }
  0x7a   : > { %4294 = vmatprep.subr.bf16.mxu1 %v5040_v4  ;;  %v427_v19 = vshll.u32 %v5624_v8, 16  ;;  %v431_v35 = vshrl.u32 %v5624_v8, 16  ;;  %v2184_v50 = vsel %vm958_vm1, %v2181_v49, %v2183_v57 }
  0x7b   : > { %4295 = vmatpush3.bf16.msra.mxu1 %v5040_v4  ;;  %v414_v4 = vsel %vm354_vm0, %v409_v52, %v413_v60  ;;  %v421_v9 = vrot.slane %v419_v62, 1  ;;  %v5069_v60 = vld [vmem:[#allocation5 + $0x30] sm:$0xff]  }
  0x7c   : > { %4487 = vmatpush3.bf16.msra.mxu0 %v5036_v63  ;;  %4296 = vmatprep.subr.bf16.mxu1 %v5047_v30  ;;  %v406_v63 = vsel %vm354_vm0, %v401_v45, %v405_v41  ;;  %v429_v29 = vrot.slane %v427_v19, 1  ;;  %v5649_v45 = vld [vmem:[%s5510_s11 + $0x60] sm:$0xff]   ;;  %v461_v19 = vrot.slane %v459_v2, 1 }
  0x7d   : > { %4488 = vmatprep.subr.bf16.mxu0 %v5042_v23  ;;  %v425_v26 = vor.u32 %v423_v11, %v421_v9  ;;  %v422_v18 = vsel %vm354_vm0, %v417_v16, %v421_v9  ;;  %v451_v58 = vshll.u32 %v5649_v45, 16  ;;  %v455_v1 = vshrl.u32 %v5649_v45, 16  ;;  %v5070_v11 = vld [vmem:[#allocation5 + $0x190] sm:$0xff]  }
  0x7e   : > { %4265 = vmatmul.mubr.bf16.gmra.mrb[4].mxu1 %v390_v32  ;;  %v2179_v32 = vrot.slane %v5536_v24, 1  ;;  %v439_v24 = vshrl.u32 %v5631_v21, 16  ;;  %v2187_v9 = vrot.slane %v5580_v12, 1 }
  0x7f   : > { %4457 = vmatmul.mubr.bf16.gmra.mrb[4].mxu0 %v1803_v36  ;;  %4268 = vmatprep.mubr.bf16.mxu1 %v398_v37  ;;  %v5640_v36 = vld [vmem:[%s5510_s11 + $0x58] sm:$0xff]   ;;  %v430_v38 = vsel %vm354_vm0, %v425_v26, %v429_v29  ;;  %v467_v26 = vshll.u32 %v5665_v5, 16 }
  0x80   : > { %4489 = vmatpush3.bf16.msra.mxu0 %v5042_v23  ;;  %4460 = vmatprep.mubr.bf16.mxu0 %v1811_v40  ;;  %v5633_v23 = vrot.slane %v1832_v6, 1  ;;  %v443_v41 = vshll.u32 %v5640_v36, 16  ;;  %v2182_v33 = vsel %vm958_vm1, %v2179_v32, %v2181_v49 }
  0x81   : > { %4490 = vmatprep.subr.bf16.mxu0 %v5043_v34  ;;  %4297 = vmatpush3.bf16.msra.mxu1 %v5047_v30  ;;  %v2178_v30 = vrot.slane %v3954_v20, 1  ;;  %v5670_v20 = vld [vmem:[%s5510_s11 + $0x78] sm:$0xff]  }
  0x82   : > { %4298 = vmatprep.subr.bf16.mxu1 %v5054_v56  ;;  %v1835_v37 = vsel %vm354_vm0, %v1830_v22, %v5633_v23  ;;  %v445_v52 = vrot.slane %v443_v41, 1  ;;  %v463_v22 = vshrl.u32 %v5653_v53, 16  ;;  %v5078_v41 = vld [vmem:[#allocation5 + $0x1a0] sm:$0xff]  }
  0x83   : > { %v2180_v40 = vsel %vm958_vm1, %v2178_v30, %v2179_v32  ;;  %v475_v30 = vshll.u32 %v5670_v20, 16 }
  0x84   : > { %4491 = vmatpush3.bf16.msra.mxu0 %v5043_v34  ;;  %v435_v34 = vshll.u32 %v5631_v21, 16 }
  0x85   : > { %4492 = vmatprep.subr.bf16.mxu0 %v5049_v46  ;;  %4299 = vmatpush3.bf16.msra.mxu1 %v5054_v56  ;;  %v5062_v56 = vld [vmem:[#allocation5 + $0x180] sm:$0xff]  }
  0x86   : > { %4269 = vmatmul.mubr.bf16.gmra.mrb[8].mxu1 %v406_v63  ;;  %4300 = vmatprep.subr.bf16.mxu1 %v5061_v27  ;;  %v437_v43 = vrot.slane %v435_v34, 1  ;;  %v447_v63 = vshrl.u32 %v5640_v36, 16  ;;  %v5072_v34 = vld [vmem:[%s5510_s11 + $0x80] ss:$0 sps:$4 sm:$0x11]  }
  0x87   : > { %4461 = vmatmul.mubr.bf16.gmra.mrb[8].mxu0 %v1819_v3  ;;  %4272 = vmatprep.mubr.bf16.mxu1 %v414_v4  ;;  %v5066_v3 = vld [vmem:[#allocation5 + $0x188] sm:$0xff]   ;;  %v453_v4 = vrot.slane %v451_v58, 1  ;;  %v2193_v58 = vrot.slane %v5613_v59, 1 }
  0x88   : > { %4493 = vmatpush3.bf16.msra.mxu0 %v5049_v46  ;;  %4464 = vmatprep.mubr.bf16.mxu0 %v1827_v7  ;;  %v433_v46 = vor.u32 %v431_v35, %v429_v29  ;;  %v441_v51 = vor.u32 %v439_v24, %v437_v43  ;;  %v449_v6 = vor.u32 %v447_v63, %v445_v52  ;;  %v2185_v7 = vrot.slane %v5566_v61, 1 }
  0x89   : > { %4494 = vmatprep.subr.bf16.mxu0 %v5050_v0  ;;  %4301 = vmatpush3.bf16.msra.mxu1 %v5061_v27  ;;  %v457_v16 = vor.u32 %v455_v1, %v453_v4  ;;  %v5674_v27 = vld [vmem:[#allocation5 + $0x80] sm:$0xff]   ;;  %v471_v29 = vshrl.u32 %v5665_v5, 16  ;;  %v469_v35 = vrot.slane %v467_v26, 1  ;;  %v5079_v1 = vld [vmem:[%s5510_s11 + $0x60] sm:$0xff]  }
  0x8a   : > { %4302 = vmatprep.subr.bf16.mxu1 %v5065_v42  ;;  %v438_v62 = vsel %vm354_vm0, %v433_v46, %v437_v43  ;;  %v454_v61 = vsel %vm354_vm0, %v449_v6, %v453_v4  ;;  %v2186_v12 = vsel %vm958_vm1, %v2183_v57, %v2185_v7  ;;  %v2188_v32 = vsel %vm958_vm1, %v2185_v7, %v2187_v9  ;;  %v5699_v4 = vld [vmem:[#allocation5 + $0x1c0] sm:$0xff]   ;;  %v5080_v6 = vld [vmem:[#allocation5 + $0x88] sm:$0xff]  }
  0x8b   : > { %v473_v24 = vor.u32 %v471_v29, %v469_v35  ;;  %v479_v43 = vshrl.u32 %v5670_v20, 16  ;;  %v483_v46 = vshll.u32 %v5072_v34, 16  ;;  %v5089_v29 = vld [vmem:[%s5510_s11 + $0x88] ss:$0 sps:$4 sm:$0x11]   ;;  %v5096_v34 = vld [vmem:[#allocation5 + $0xa8] sm:$0xff]  }
  0x8c   : > { %4495 = vmatpush3.bf16.msra.mxu0 %v5050_v0  ;;  %v446_v0 = vsel %vm354_vm0, %v441_v51, %v445_v52  ;;  %v5075_v52 = vld [vmem:[%s5510_s11 + $0x50] sm:$0xff]  }
  0x8d   : > { %4496 = vmatprep.subr.bf16.mxu0 %v5056_v28  ;;  %4303 = vmatpush3.bf16.msra.mxu1 %v5065_v42  ;;  %v485_v57 = vrot.slane %v483_v46, 1  ;;  %v5101_v46 = vld [vmem:[%s5510_s11 + $0x38] sm:$0xff]  }
  0x8e   : > { %4273 = vmatmul.mubr.bf16.gmra.mrb[12].mxu1 %v422_v18  ;;  %4304 = vmatprep.subr.bf16.mxu1 %v5069_v60  ;;  %v5074_v18 = vld [vmem:[#allocation5 + $0x198] sm:$0xff]  }
  0x8f   : > { %4465 = vmatmul.mubr.bf16.gmra.mrb[12].mxu0 %v1835_v37  ;;  %4276 = vmatprep.mubr.bf16.mxu1 %v430_v38  ;;  %v465_v37 = vor.u32 %v463_v22, %v461_v19  ;;  %v2189_v38 = vrot.slane %v5590_v31, 1  ;;  %v5085_v22 = vld [vmem:[%s5510_s11 + $0x78] sm:$0xff]  }
  0x90   : > { %4497 = vmatpush3.bf16.msra.mxu0 %v5056_v28  ;;  %4500 = vmatprep.mubr.bf16.mxu0 %v2180_v40  ;;  %v462_v28 = vsel %vm354_vm0, %v457_v16, %v461_v19  ;;  %v2191_v40 = vrot.slane %v5604_v48, 1  ;;  %v5084_v16 = vld [vmem:[#allocation5 + $0x90] sm:$0xff]  }
  0x91   : > { %4498 = vmatprep.subr.bf16.mxu0 %v5057_v39  ;;  %4305 = vmatpush3.bf16.msra.mxu1 %v5069_v60  ;;  %v470_v42 = vsel %vm354_vm0, %v465_v37, %v469_v35  ;;  %v2190_v49 = vsel %vm958_vm1, %v2187_v9, %v2189_v38  ;;  %v2195_v60 = vrot.slane %v5075_v52, 1  ;;  %v5081_v9 = vld [vmem:[%s5510_s11 + $0x68] sm:$0xff]   ;;  %v5091_v35 = vld [vmem:[%s5510_s11 + $0x10] sm:$0xff]   ;;  %v5115_v52 = vld [vmem:[#allocation5 + $0x1e8] sm:$0xff]  }
  0x92   : > { %4306 = vmatprep.subr.bf16.mxu1 %v5073_v13  ;;  %v2192_v31 = vsel %vm958_vm1, %v2189_v38, %v2191_v40  ;;  %v5104_v37 = vld [vmem:[#allocation5 + $0xb8] sm:$0xff]   ;;  %v5095_v38 = vld [vmem:[%s5510_s11 + $0x20] sm:$0xff]  }
  0x93   : > { %v2196_v2 = vsel %vm958_vm1, %v2193_v58, %v2195_v60 }
  0x94   : > { %4499 = vmatpush3.bf16.msra.mxu0 %v5057_v39  ;;  %v477_v39 = vrot.slane %v475_v30, 1 }
  0x95   : > { %4532 = vmatprep.subr.bf16.mxu0 %v5062_v56  ;;  %4307 = vmatpush3.bf16.msra.mxu1 %v5073_v13  ;;  %v5083_v13 = vld [vmem:[%s5510_s11 + $0x70] sm:$0xff]  }
  0x96   : > { %4277 = vmatmul.mubr.bf16.gmra.mrb[16].mxu1 %v438_v62  ;;  %4340 = vmatprep.subr.bf16.mxu1 %v5674_v27  ;;  %v478_v51 = vsel %vm354_vm0, %v473_v24, %v477_v39  ;;  %v481_v48 = vor.u32 %v479_v43, %v477_v39  ;;  %v5086_v62 = vld [vmem:[#allocation5 + $0x1b0] sm:$0xff]   ;;  %v2203_v19 = vrot.slane %v5083_v13, 1  ;;  %v5098_v24 = vld [vmem:[#allocation5 + $0x1c8] sm:$0xff]   ;;  %v5099_v39 = vld [vmem:[%s5510_s11 + $0x30] sm:$0xff]  }
  0x97   : > { %4501 = vmatmul.mubr.bf16.vlgmr.msra.gmra.mrb[0].mxu0 %v2182_v33  ;;  %4280 = vmatprep.mubr.bf16.mxu1 %v446_v0  ;;  %v5077_v33 = vld [vmem:[%s5510_s11 + $0x58] sm:$0xff]   ;;  %v2194_v0 = vsel %vm958_vm1, %v2191_v40, %v2193_v58  ;;  %v5106_v40 = vld [vmem:[#allocation5 + $0x1d8] sm:$0xff]   ;;  %v5119_v58 = vld [vmem:[#allocation5 + $0x1f0] sm:$0xff]  }
  0x98   : > { %4533 = vmatpush3.bf16.msra.mxu0 %v5062_v56  ;;  %4504 = vmatprep.mubr.bf16.mxu0 %v2184_v50  ;;  %v5082_v56 = vld [vmem:[#allocation5 + $0x1a8] sm:$0xff]   ;;  %v486_v63 = vsel %vm354_vm0, %v481_v48, %v485_v57  ;;  %v5090_v50 = vld [vmem:[#allocation5 + $0x1b8] sm:$0xff]   ;;  %v2197_v59 = vrot.slane %v5077_v33, 1 }
  0x99   : > { %4534 = vmatprep.subr.bf16.mxu0 %v5066_v3  ;;  %v5171_v48 = vld [vmem:[%s5510_s11 + $0x8] sm:$0xff]  }
  0x9a   : > { %v2198_v7 = vsel %vm958_vm1, %v2195_v60, %v2197_v59  ;;  %v960_v57 = vrot.slane %v5171_v48, 1  ;;  %v5105_v60 = vld [vmem:[%s5510_s11 + $0x48] sm:$0xff]  }
  0x9c   : > { %4535 = vmatpush3.bf16.msra.mxu0 %v5066_v3  ;;  %v2199_v3 = vrot.slane %v5079_v1, 1  ;;  %v5762_v1 = vld [vmem:[#allocation5 + $0x200] sm:$0xff]  }
  0x9d   : > { %4536 = vmatprep.subr.bf16.mxu0 %v5070_v11 }
  0x9e   : > { %4281 = vmatmul.mubr.bf16.gmra.mrb[20].mxu1 %v454_v61  ;;  %v5087_v61 = vld [vmem:[%s5510_s11 + $0x80] sm:$0xff]  }
  0x9f   : > { %4505 = vmatmul.mubr.bf16.gmra.mrb[4].mxu0 %v2186_v12  ;;  %4284 = vmatprep.mubr.bf16.mxu1 %v462_v28  ;;  %v5092_v28 = vld [vmem:[#allocation5 + $0xa0] sm:$0xff]  }
  0xa0   : > { %4508 = vmatprep.mubr.bf16.mxu0 %v2188_v32  ;;  %4537 = vmatpush3.bf16.msra.mxu0 %v5070_v11  ;;  %v2200_v11 = vsel %vm958_vm1, %v2197_v59, %v2199_v3  ;;  %v5766_v59 = vld [vmem:[%s5510_s11 + $0x28] sm:$0xff]  }
  0xa1   : > { %4538 = vmatprep.subr.bf16.mxu0 %v5074_v18 }
  0xa4   : > { %4539 = vmatpush3.bf16.msra.mxu0 %v5074_v18 }
  0xa5   : > { %4540 = vmatprep.subr.bf16.mxu0 %v5078_v41 }
  0xa6   : > { %4285 = vmatmul.mubr.bf16.gmra.mrb[24].mxu1 %v470_v42  ;;  %v5741_v42 = vld [vmem:[%s5510_s11 + $0x20] sm:$0xff]  }
  0xa7   : > { %4509 = vmatmul.mubr.bf16.gmra.mrb[8].mxu0 %v2190_v49  ;;  %4288 = vmatprep.mubr.bf16.mxu1 %v478_v51  ;;  %v3400_v49 = vrot.slane %v5741_v42, 1  ;;  %v5103_v51 = vld [vmem:[%s5510_s11 + $0x40] sm:$0xff]  }
  0xa8   : > { %4512 = vmatprep.mubr.bf16.mxu0 %v2192_v31  ;;  %4541 = vmatpush3.bf16.msra.mxu0 %v5078_v41  ;;  %v5111_v41 = vld [vmem:[#allocation5 + $0x1e0] sm:$0xff]  }
  0xa9   : > { %4542 = vmatprep.subr.bf16.mxu0 %v5082_v56 }
  0xac   : > { %4543 = vmatpush3.bf16.msra.mxu0 %v5082_v56 }
  0xad   : > { %4544 = vmatprep.subr.bf16.mxu0 %v5086_v62 }
  0xae   : > { %4289 = vmatmul.mubr.bf16.gmra.mrb[28].mxu1 %v486_v63  ;;  %v5108_v63 = vld [vmem:[%s5510_s11 + $0x50] sm:$0xff]  }
  0xaf   : > { %4513 = vmatmul.mubr.bf16.gmra.mrb[12].mxu0 %v2194_v0  ;;  %4308 = vmatprep.mubr.bf16.mxu1 %v5522_v14  ;;  %v2201_v14 = vrot.slane %v5081_v9, 1  ;;  %v5760_v0 = vld [vmem:[%s5510_s11 + $0x14] sm:$0xf] }
  0xb0   : > { %4516 = vmatprep.mubr.bf16.mxu0 %v2196_v2  ;;  %4545 = vmatpush3.bf16.msra.mxu0 %v5086_v62  ;;  %v5173_v2 = vld [vmem:[%s5510_s11 + $0x18] sm:$0xff]  }
  0xb1   : > { %4546 = vmatprep.subr.bf16.mxu0 %v5090_v50  ;;  %v2202_v26 = vsel %vm958_vm1, %v2199_v3, %v2201_v14  ;;  %v2204_v12 = vsel %vm958_vm1, %v2201_v14, %v2203_v19  ;;  %v5769_v3 = vld [vmem:[%s5510_s11 + $0x30] sm:$0xff]  }
  0xb4   : > { %4547 = vmatpush3.bf16.msra.mxu0 %v5090_v50  ;;  %v964_v50 = vrot.slane %v5173_v2, 1 }
  0xb5   : > { %4580 = vmatprep.subr.bf16.mxu0 %v5699_v4 }
  0xb6   : > { %4309 = vmatmul.mubr.bf16.vlgmr.msra.gmra.mrb[0].mxu1 %v5525_v15  ;;  %v5088_v15 = vld [vmem:[#allocation5 + $0x98] sm:$0xff]  }
  0xb7   : > { %4517 = vmatmul.mubr.bf16.gmra.mrb[16].mxu0 %v2198_v7  ;;  %4341 = vmatpush3.bf16.msra.mxu1 %v5674_v27  ;;  %v2207_v27 = vrot.slane %v5087_v61, 1  ;;  %v5174_v7 = vld [vmem:[%s5510_s11 + $0x20] sm:$0xff]   ;;  %v3404_v61 = vrot.slane %v5769_v3, 1 }
  0xb8   : > { %4312 = vmatprep.mubr.bf16.mxu1 %v5539_v25  ;;  %4520 = vmatprep.mubr.bf16.mxu0 %v2200_v11  ;;  %v2205_v25 = vrot.slane %v5085_v22, 1  ;;  %v966_v9 = vrot.slane %v5174_v7, 1  ;;  %v5776_v11 = vld [vmem:[%s5510_s11 + $0x38] sm:$0xff]   ;;  %v3402_v22 = vrot.slane %v5766_v59, 1 }
  0xb9   : > { %4342 = vmatprep.subr.bf16.mxu1 %v5080_v6  ;;  %v5118_v7 = vld [vmem:[%s5510_s11 + $0x78] sm:$0xff]  }
  0xba   : > { %v2206_v30 = vsel %vm958_vm1, %v2203_v19, %v2205_v25  ;;  %v2208_v32 = vsel %vm958_vm1, %v2205_v25, %v2207_v27  ;;  %v5781_v19 = vld [vmem:[%s5510_s11 + $0x40] sm:$0xff]   ;;  %v5791_v25 = vsel %vm958_vm1, %v3400_v49, %v3402_v22 }
  0xbb   : > { %4343 = vmatpush3.bf16.msra.mxu1 %v5080_v6  ;;  %v5112_v6 = vld [vmem:[%s5510_s11 + $0x60] sm:$0xff]  }
  0xbc   : > { %4344 = vmatprep.subr.bf16.mxu1 %v5084_v16 }
  0xbe   : > { %4313 = vmatmul.mubr.bf16.gmra.mrb[4].mxu1 %v5552_v47  ;;  %v2209_v47 = vrot.slane %v5089_v29, 1 }
  0xbf   : > { %4521 = vmatmul.mubr.bf16.gmra.mrb[20].mxu0 %v2202_v26  ;;  %4316 = vmatprep.mubr.bf16.mxu1 %v5561_v54  ;;  %v5100_v54 = vld [vmem:[#allocation5 + $0xb0] sm:$0xff]  }
  0xc0   : > { %4524 = vmatprep.mubr.bf16.mxu0 %v2204_v12  ;;  %4345 = vmatpush3.bf16.msra.mxu1 %v5084_v16  ;;  %v2210_v18 = vsel %vm958_vm1, %v2207_v27, %v2209_v47  ;;  %v5113_v16 = vld [vmem:[#allocation5 + $0xc8] sm:$0xff]   ;;  %v3406_v27 = vrot.slane %v5776_v11, 1 }
  0xc1   : > { %4346 = vmatprep.subr.bf16.mxu1 %v5088_v15 }
  0xc2   : > { %v5809_v47 = vsel %vm958_vm1, %v3404_v61, %v3406_v27 }
  0xc4   : > { %4347 = vmatpush3.bf16.msra.mxu1 %v5088_v15  ;;  %v5788_v15 = vld [vmem:[%s5510_s11 + $0x48] sm:$0xff]  }
  0xc5   : > { %4348 = vmatprep.subr.bf16.mxu1 %v5092_v28 }
  0xc6   : > { %4317 = vmatmul.mubr.bf16.gmra.mrb[8].mxu1 %v5576_v10  ;;  %v5724_v10 = vld [vmem:[#allocation5 + $0xc0] sm:$0xff]  }
  0xc7   : > { %4525 = vmatmul.mubr.bf16.gmra.mrb[24].mxu0 %v2206_v30  ;;  %4320 = vmatprep.mubr.bf16.mxu1 %v5584_v17  ;;  %v5093_v17 = vld [vmem:[%s5510_s11 + $0x18] sm:$0xff]   ;;  %v5801_v30 = vsel %vm958_vm1, %v3402_v22, %v3404_v61 }
  0xc8   : > { %4528 = vmatprep.mubr.bf16.mxu0 %v2208_v32  ;;  %4349 = vmatpush3.bf16.msra.mxu1 %v5092_v28  ;;  %v5795_v28 = vld [vmem:[%s5510_s11 + $0x50] sm:$0xff]   ;;  %v3408_v32 = vrot.slane %v5781_v19, 1  ;;  %v5130_v61 = vld [vmem:[#allocation5 + $0xe8] sm:$0xff]  }
  0xc9   : > { %4350 = vmatprep.subr.bf16.mxu1 %v5096_v34 }
  0xcc   : > { %4351 = vmatpush3.bf16.msra.mxu1 %v5096_v34  ;;  %v5806_v34 = vld [vmem:[%s5510_s11 + $0x58] sm:$0xff]  }
  0xcd   : > { %4352 = vmatprep.subr.bf16.mxu1 %v5100_v54 }
  0xce   : > { %4321 = vmatmul.mubr.bf16.gmra.mrb[12].mxu1 %v5601_v44  ;;  %v5102_v44 = vld [vmem:[#allocation5 + $0x1d0] sm:$0xff]  }
  0xcf   : > { %4529 = vmatmul.mubr.bf16.gmra.mrb[28].mxu0 %v2210_v18  ;;  %4324 = vmatprep.mubr.bf16.mxu1 %v5609_v55  ;;  %v5097_v55 = vld [vmem:[%s5510_s11 + $0x28] sm:$0xff]  }
  0xd0   : > { %4548 = vmatprep.mubr.bf16.mxu0 %v5091_v35  ;;  %4353 = vmatpush3.bf16.msra.mxu1 %v5100_v54  ;;  %v3410_v54 = vrot.slane %v5788_v15, 1  ;;  %v5175_v18 = vld [vmem:[%s5510_s11 + $0x28] sm:$0xff]  }
  0xd1   : > { %4354 = vmatprep.subr.bf16.mxu1 %v5104_v37  ;;  %v968_v35 = vrot.slane %v5175_v18, 1 }
  0xd4   : > { %4355 = vmatpush3.bf16.msra.mxu1 %v5104_v37  ;;  %v5117_v37 = vld [vmem:[#allocation5 + $0xd0] sm:$0xff]  }
  0xd5   : > { %4388 = vmatprep.subr.bf16.mxu1 %v5724_v10 }
  0xd6   : > { %4325 = vmatmul.mubr.bf16.gmra.mrb[16].mxu1 %v5624_v8  ;;  %v937_v8 = vld [vmem:[%s5510_s11] sm:$0xe] }
  0xd7   : > { %4549 = vmatmul.mubr.bf16.vlgmr.msra.gmra.mrb[0].mxu0 %v5093_v17  ;;  %4328 = vmatprep.mubr.bf16.mxu1 %v5631_v21  ;;  %v5738_v21 = vld [vmem:[%s5510_s11 + $0x18] sm:$0xff]   ;;  %v5814_v17 = vld [vmem:[%s5510_s11 + $0x60] sm:$0xff]  }
  0xd8   : > { %4581 = vmatpush3.bf16.msra.mxu0 %v5699_v4  ;;  %4552 = vmatprep.mubr.bf16.mxu0 %v5095_v38  ;;  %v3398_v43 = vrot.slane %v5738_v21, 1  ;;  %v3376_v4 = vld [vmem:[%s5510_s11 + $0x10] sm:$0xe]  ;;  %v5817_v38 = vsel %vm958_vm1, %v3406_v27, %v3408_v32 }
  0xd9   : > { %4582 = vmatprep.subr.bf16.mxu0 %v5098_v24  ;;  %v4012_v13 = vcombine.low %v3376_v4, %v5760_v0 }
  0xda   : > { %v5749_v31 = vsel %vm958_vm1, %v3398_v43, %v3400_v49  ;;  %v969_v49 = vsel %vm958_vm1, %v966_v9, %v968_v35 }
  0xdb   : > { %v3397_v26 = vrot.slane %v4012_v13, 1  ;;  %v5120_v13 = vld [vmem:[%s5510_s11 + $0x80] sm:$0xff]  }
  0xdc   : > { %4583 = vmatpush3.bf16.msra.mxu0 %v5098_v24  ;;  %v5821_v24 = vsel %vm958_vm1, %v3408_v32, %v3410_v54  ;;  %v5178_v32 = vld [vmem:[%s5510_s11 + $0x40] sm:$0xff]  }
  0xdd   : > { %4584 = vmatprep.subr.bf16.mxu0 %v5102_v44  ;;  %v5798_v29 = vsel %vm958_vm1, %v3397_v26, %v3398_v43  ;;  %v5114_v43 = vld [vmem:[%s5510_s11 + $0x68] sm:$0xff]   ;;  %v2995_v26 = vshll.u32 %v5738_v21, 16 }
  0xde   : > { %4329 = vmatmul.mubr.bf16.gmra.mrb[20].mxu1 %v5640_v36  ;;  %v5170_v36 = vld [vmem:[%s5510_s11 + $0x4] sm:$0xf] }
  0xdf   : > { %4553 = vmatmul.mubr.bf16.gmra.mrb[4].mxu0 %v5097_v55  ;;  %4332 = vmatprep.mubr.bf16.mxu1 %v5649_v45  ;;  %v3896_v45 = vcombine.low %v937_v8, %v5170_v36  ;;  %v2854_v55 = vld [vmem:[%s5510_s11 + $0x10] sm:$0xf]  ;;  %v3416_v8 = vrot.slane %v5814_v17, 1 }
  0xe0   : > { %4556 = vmatprep.mubr.bf16.mxu0 %v5099_v39  ;;  %4585 = vmatpush3.bf16.msra.mxu0 %v5102_v44  ;;  %v3414_v44 = vrot.slane %v5806_v34, 1  ;;  %v5826_v39 = vld [vmem:[%s5510_s11 + $0x68] sm:$0xff]   ;;  %v5840_v36 = vld [vmem:[%s5510_s11 + $0x70] sm:$0xff]   ;;  %v3987_v48 = vcombine.low %v2854_v55, %v5760_v0 }
  0xe1   : > { %4586 = vmatprep.subr.bf16.mxu0 %v5106_v40  ;;  %v959_v56 = vrot.slane %v3896_v45, 1  ;;  %v5134_v55 = vld [vmem:[#allocation5 + $0xf0] sm:$0xff]  }
  0xe2   : > { %v5843_v45 = vsel %vm958_vm1, %v3414_v44, %v3416_v8  ;;  %v2990_v2 = vshll.u32 %v3987_v48, 16 }
  0xe3   : > { %v961_v62 = vsel %vm958_vm1, %v959_v56, %v960_v57  ;;  %v5121_v56 = vld [vmem:[#allocation5 + $0xd8] sm:$0xff]  }
  0xe4   : > { %4587 = vmatpush3.bf16.msra.mxu0 %v5106_v40  ;;  %v2992_v22 = vrot.slane %v2990_v2, 1 }
  0xe5   : > { %4588 = vmatprep.subr.bf16.mxu0 %v5111_v41 }
  0xe6   : > { %4333 = vmatmul.mubr.bf16.gmra.mrb[24].mxu1 %v5653_v53  ;;  %v5123_v53 = vld [vmem:[#allocation5 + $0x1f8] sm:$0xff]  }
  0xe7   : > { %4557 = vmatmul.mubr.bf16.gmra.mrb[8].mxu0 %v5101_v46  ;;  %4336 = vmatprep.mubr.bf16.mxu1 %v5665_v5  ;;  %v5172_v5 = vld [vmem:[%s5510_s11 + $0x10] sm:$0xff]  }
  0xe8   : > { %4560 = vmatprep.mubr.bf16.mxu0 %v5103_v51  ;;  %4589 = vmatpush3.bf16.msra.mxu0 %v5111_v41  ;;  %v962_v33 = vrot.slane %v5172_v5, 1  ;;  %v967_v41 = vsel %vm958_vm1, %v964_v50, %v966_v9  ;;  %v5116_v51 = vld [vmem:[%s5510_s11 + $0x70] sm:$0xff]  }
  0xe9   : > { %4590 = vmatprep.subr.bf16.mxu0 %v5115_v52 }
  0xea   : > { %v963_v14 = vsel %vm958_vm1, %v960_v57, %v962_v33  ;;  %v965_v12 = vsel %vm958_vm1, %v962_v33, %v964_v50  ;;  %v5848_v57 = vld [vmem:[%s5510_s11 + $0x78] sm:$0xff]  }
  0xeb   : > { %v3422_v0 = vrot.slane %v5848_v57, 1  ;;  %v5126_v50 = vld [vmem:[#allocation5 + $0xe0] sm:$0xff]  }
  0xec   : > { %4591 = vmatpush3.bf16.msra.mxu0 %v5115_v52  ;;  %v3418_v52 = vrot.slane %v5826_v39, 1 }
  0xed   : > { %4592 = vmatprep.subr.bf16.mxu0 %v5119_v58 }
  0xee   : > { %4337 = vmatmul.mubr.bf16.gmra.mrb[28].mxu1 %v5670_v20  ;;  %v5110_v20 = vld [vmem:[%s5510_s11 + $0x58] sm:$0xff]  }
  0xef   : > { %4561 = vmatmul.mubr.bf16.gmra.mrb[12].mxu0 %v5105_v60  ;;  %4356 = vmatprep.mubr.bf16.mxu1 %v961_v62  ;;  %v3420_v60 = vrot.slane %v5840_v36, 1  ;;  %v5176_v62 = vld [vmem:[%s5510_s11 + $0x30] sm:$0xff]  }
  0xf0   : > { %4564 = vmatprep.mubr.bf16.mxu0 %v5108_v63  ;;  %4593 = vmatpush3.bf16.msra.mxu0 %v5119_v58  ;;  %v5851_v58 = vsel %vm958_vm1, %v3416_v8, %v3418_v52  ;;  %v970_v63 = vrot.slane %v5176_v62, 1  ;;  %v3007_v62 = vshrl.u32 %v5741_v42, 16 }
  0xf1   : > { %4594 = vmatprep.subr.bf16.mxu0 %v5123_v53  ;;  %v5857_v33 = vsel %vm958_vm1, %v3418_v52, %v3420_v60  ;;  %v5864_v4 = vsel %vm958_vm1, %v3420_v60, %v3422_v0 }
  0xf4   : > { %4595 = vmatpush3.bf16.msra.mxu0 %v5123_v53  ;;  %v5177_v53 = vld [vmem:[%s5510_s11 + $0x38] sm:$0xff]  }
  0xf5   : > { %4628 = vmatprep.subr.bf16.mxu0 %v5762_v1  ;;  %v972_v5 = vrot.slane %v5177_v53, 1  ;;  %v5138_v53 = vld [vmem:[#allocation5 + $0xf8] sm:$0xff]  }
  0xf6   : > { %4357 = vmatmul.mubr.bf16.vlgmr.msra.gmra.mrb[0].mxu1 %v963_v14 }
  0xf7   : > { %4565 = vmatmul.mubr.bf16.gmra.mrb[16].mxu0 %v5110_v20  ;;  %4389 = vmatpush3.bf16.msra.mxu1 %v5724_v10  ;;  %v3412_v10 = vrot.slane %v5795_v28, 1  ;;  %v5861_v20 = vld [vmem:[%s5510_s11 + $0x80] sm:$0xff]   ;;  %v973_v9 = vsel %vm958_vm1, %v970_v63, %v972_v5 }
  0xf8   : > { %4360 = vmatprep.mubr.bf16.mxu1 %v965_v12  ;;  %4568 = vmatprep.mubr.bf16.mxu0 %v5112_v6  ;;  %v971_v6 = vsel %vm958_vm1, %v968_v35, %v970_v63  ;;  %v3424_v14 = vrot.slane %v5861_v20, 1  ;;  %v5873_v12 = vld [vmem:[%s5510_s11 + $0x88] sm:$0xff]   ;;  %v3011_v63 = vshll.u32 %v5766_v59, 16 }
  0xf9   : > { %4390 = vmatprep.subr.bf16.mxu1 %v5113_v16  ;;  %v5829_v40 = vsel %vm958_vm1, %v3410_v54, %v3412_v10  ;;  %v5835_v46 = vsel %vm958_vm1, %v3412_v10, %v3414_v44  ;;  %v974_v54 = vrot.slane %v5178_v32, 1  ;;  %v3426_v18 = vrot.slane %v5873_v12, 1  ;;  %v5179_v35 = vld [vmem:[%s5510_s11 + $0x48] sm:$0xff]   ;;  %v5132_v32 = vld [vmem:[#allocation5 + $0x208] sm:$0xff]  }
  0xfa   : > { %v5876_v27 = vsel %vm958_vm1, %v3422_v0, %v3424_v14  ;;  %v2997_v44 = vrot.slane %v2995_v26, 1  ;;  %v5180_v0 = vld [vmem:[%s5510_s11 + $0x50] sm:$0xff]   ;;  %v3015_v26 = vshrl.u32 %v5766_v59, 16 }
  0xfb   : > { %4391 = vmatpush3.bf16.msra.mxu1 %v5113_v16  ;;  %v2988_v16 = vshrl.u32 %v3987_v48, 16  ;;  %v5882_v8 = vsel %vm958_vm1, %v3424_v14, %v3426_v18  ;;  %v3019_v14 = vshll.u32 %v5769_v3, 16 }
  0xfc   : > { %4392 = vmatprep.subr.bf16.mxu1 %v5117_v37 }
  0xfd   : > { %v2993_v10 = vor.u32 %v2992_v22, %v2988_v16 }
  0xfe   : > { %4361 = vmatmul.mubr.bf16.gmra.mrb[4].mxu1 %v967_v41  ;;  %v5885_v41 = vld [vmem:[%s5510_s11 + $0x90] ss:$0 sps:$4 sm:$0x11]  }
  0xff   : > { %4569 = vmatmul.mubr.bf16.gmra.mrb[20].mxu0 %v5114_v43  ;;  %4364 = vmatprep.mubr.bf16.mxu1 %v969_v49  ;;  %v975_v43 = vsel %vm958_vm1, %v972_v5, %v974_v54  ;;  %v5122_v49 = vld [vmem:[%s5510_s11 + $0x88] sm:$0xff]   ;;  %v3428_v48 = vrot.slane %v5885_v41, 1  ;;  %v2998_v60 = vsel %vm354_vm0, %v2993_v10, %v2997_v44 }
 0x100   : > { %4572 = vmatprep.mubr.bf16.mxu0 %v5116_v51  ;;  %4393 = vmatpush3.bf16.msra.mxu1 %v5117_v37  ;;  %v976_v37 = vrot.slane %v5179_v35, 1  ;;  %v3003_v51 = vshll.u32 %v5741_v42, 16  ;;  %v3013_v42 = vrot.slane %v3011_v63, 1  ;;  %v5909_v35 = vld [vmem:[#allocation5 + $0x100] sm:$0xff]   ;;  %v3039_v63 = vshrl.u32 %v5781_v19, 16 }
 0x101   : > { %4394 = vmatprep.subr.bf16.mxu1 %v5121_v56  ;;  %v5897_v5 = vsel %vm958_vm1, %v3426_v18, %v3428_v48  ;;  %v3027_v18 = vshll.u32 %v5776_v11, 16 }
 0x102   : > { %v977_v52 = vsel %vm958_vm1, %v974_v54, %v976_v37  ;;  %v3005_v2 = vrot.slane %v3003_v51, 1  ;;  %v3023_v54 = vshrl.u32 %v5769_v3, 16  ;;  %v3017_v59 = vor.u32 %v3015_v26, %v3013_v42  ;;  %v5136_v51 = vld [vmem:[#allocation5 + $0x210] sm:$0xff]  }
 0x103   : > { %v3047_v26 = vshrl.u32 %v5788_v15, 16 }
 0x104   : > { %4395 = vmatpush3.bf16.msra.mxu1 %v5121_v56  ;;  %v2999_v56 = vshrl.u32 %v5738_v21, 16  ;;  %v978_v21 = vrot.slane %v5180_v0, 1  ;;  %v5140_v0 = vld [vmem:[#allocation5 + $0x218] sm:$0xff]  }
 0x105   : > { %4396 = vmatprep.subr.bf16.mxu1 %v5126_v50 }
 0x106   : > { %4365 = vmatmul.mubr.bf16.gmra.mrb[8].mxu1 %v971_v6  ;;  %v5181_v6 = vld [vmem:[%s5510_s11 + $0x58] sm:$0xff]  }
 0x107   : > { %4573 = vmatmul.mubr.bf16.gmra.mrb[24].mxu0 %v5118_v7  ;;  %4368 = vmatprep.mubr.bf16.mxu1 %v973_v9  ;;  %v980_v7 = vrot.slane %v5181_v6, 1  ;;  %v3009_v9 = vor.u32 %v3007_v62, %v3005_v2 }
 0x108   : > { %4576 = vmatprep.mubr.bf16.mxu0 %v5120_v13  ;;  %4397 = vmatpush3.bf16.msra.mxu1 %v5126_v50  ;;  %v3001_v50 = vor.u32 %v2999_v56, %v2997_v44  ;;  %v979_v13 = vsel %vm958_vm1, %v976_v37, %v978_v21  ;;  %v5183_v37 = vld [vmem:[%s5510_s11 + $0x60] sm:$0xff]   ;;  %v3021_v44 = vrot.slane %v3019_v14, 1  ;;  %v3035_v56 = vshll.u32 %v5781_v19, 16 }
 0x109   : > { %4398 = vmatprep.subr.bf16.mxu1 %v5130_v61  ;;  %v981_v22 = vsel %vm958_vm1, %v978_v21, %v980_v7  ;;  %v982_v10 = vrot.slane %v5183_v37, 1  ;;  %v5185_v21 = vld [vmem:[%s5510_s11 + $0x70] sm:$0xff]   ;;  %v3051_v14 = vshll.u32 %v5795_v28, 16  ;;  %v5187_v37 = vld [vmem:[%s5510_s11 + $0x80] ss:$0 sps:$4 sm:$0x11]  }
 0x10a   : > { %v3006_v16 = vsel %vm354_vm0, %v3001_v50, %v3005_v2  ;;  %v3025_v3 = vor.u32 %v3023_v54, %v3021_v44  ;;  %v3022_v48 = vsel %vm354_vm0, %v3017_v59, %v3021_v44  ;;  %v986_v2 = vrot.slane %v5185_v21, 1 }
 0x10b   : > { %v3037_v50 = vrot.slane %v3035_v56, 1  ;;  %v3059_v54 = vshll.u32 %v5806_v34, 16  ;;  %v3053_v44 = vrot.slane %v3051_v14, 1  ;;  %v3083_v21 = vshll.u32 %v5840_v36, 16  ;;  %v5148_v14 = vld [vmem:[%s5510_s11 + $0x20] sm:$0xff]  }
 0x10c   : > { %4399 = vmatpush3.bf16.msra.mxu1 %v5130_v61  ;;  %v3014_v61 = vsel %vm354_vm0, %v3009_v9, %v3013_v42 }
 0x10d   : > { %4400 = vmatprep.subr.bf16.mxu1 %v5134_v55 }
 0x10e   : > { %4369 = vmatmul.mubr.bf16.gmra.mrb[12].mxu1 %v975_v43 }
 0x10f   : > { %4577 = vmatmul.mubr.bf16.gmra.mrb[28].mxu0 %v5122_v49  ;;  %4372 = vmatprep.mubr.bf16.mxu1 %v977_v52  ;;  %v3029_v49 = vrot.slane %v3027_v18, 1  ;;  %v983_v52 = vsel %vm958_vm1, %v980_v7, %v982_v10  ;;  %v5186_v7 = vld [vmem:[%s5510_s11 + $0x78] sm:$0xff]  }
 0x110   : > { %4596 = vmatprep.mubr.bf16.mxu0 %v2998_v60  ;;  %4401 = vmatpush3.bf16.msra.mxu1 %v5134_v55  ;;  %v5184_v55 = vld [vmem:[%s5510_s11 + $0x68] sm:$0xff]   ;;  %v988_v9 = vrot.slane %v5186_v7, 1  ;;  %v5150_v18 = vld [vmem:[#allocation5 + $0x228] sm:$0xff]   ;;  %v3087_v7 = vshrl.u32 %v5840_v36, 16 }
 0x111   : > { %4402 = vmatprep.subr.bf16.mxu1 %v5138_v53  ;;  %v984_v43 = vrot.slane %v5184_v55, 1  ;;  %v3030_v62 = vsel %vm354_vm0, %v3025_v3, %v3029_v49  ;;  %v3061_v55 = vrot.slane %v3059_v54, 1  ;;  %v5141_v3 = vld [vmem:[%s5510_s11 + $0x8] sm:$0xff]   ;;  %v3107_v54 = vshll.u32 %v5873_v12, 16 }
 0x113   : > { %v985_v60 = vsel %vm958_vm1, %v982_v10, %v984_v43  ;;  %v987_v19 = vsel %vm958_vm1, %v984_v43, %v986_v2  ;;  %v990_v10 = vrot.slane %v5187_v37, 1  ;;  %v5155_v43 = vld [vmem:[#allocation5 + $0x230] sm:$0xff]  }
 0x114   : > { %4403 = vmatpush3.bf16.msra.mxu1 %v5138_v53  ;;  %v3043_v53 = vshll.u32 %v5788_v15, 16 }
 0x115   : > { %4676 = vmatprep.subr.bf16.mxu1 %v5909_v35 }
 0x116   : > { %4373 = vmatmul.mubr.bf16.gmra.mrb[16].mxu1 %v979_v13  ;;  %v3045_v42 = vrot.slane %v3043_v53, 1  ;;  %v5145_v13 = vld [vmem:[#allocation5 + $0x220] sm:$0xff]  }
 0x117   : > { %4597 = vmatmul.mubr.bf16.vlgmr.msra.gmra.mrb[0].mxu0 %v3006_v16  ;;  %4376 = vmatprep.mubr.bf16.mxu1 %v981_v22  ;;  %v989_v22 = vsel %vm958_vm1, %v986_v2, %v988_v9  ;;  %v5146_v2 = vld [vmem:[%s5510_s11 + $0x18] sm:$0xff]  }
 0x118   : > { %4629 = vmatpush3.bf16.msra.mxu0 %v5762_v1  ;;  %4600 = vmatprep.mubr.bf16.mxu0 %v3014_v61  ;;  %v3031_v1 = vshrl.u32 %v5776_v11, 16  ;;  %v3041_v11 = vor.u32 %v3039_v63, %v3037_v50  ;;  %v3049_v59 = vor.u32 %v3047_v26, %v3045_v42  ;;  %v5189_v26 = vld [vmem:[#allocation5 + $0x110] sm:$0xff]  }
 0x119   : > { %4630 = vmatprep.subr.bf16.mxu0 %v5132_v32 }
 0x11a   : > { %v3033_v6 = vor.u32 %v3031_v1, %v3029_v49  ;;  %v3046_v61 = vsel %vm354_vm0, %v3041_v11, %v3045_v42  ;;  %v3067_v49 = vshll.u32 %v5814_v17, 16  ;;  %v5160_v1 = vld [vmem:[#allocation5 + $0x238] sm:$0xff]   ;;  %v3085_v11 = vrot.slane %v3083_v21, 1 }
 0x11c   : > { %4631 = vmatpush3.bf16.msra.mxu0 %v5132_v32  ;;  %v3038_v16 = vsel %vm354_vm0, %v3033_v6, %v3037_v50  ;;  %v3055_v32 = vshrl.u32 %v5795_v28, 16  ;;  %v991_v28 = vsel %vm958_vm1, %v988_v9, %v990_v10  ;;  %v3079_v50 = vshrl.u32 %v5826_v39, 16 }
 0x11d   : > { %4632 = vmatprep.subr.bf16.mxu0 %v5136_v51  ;;  %v3091_v9 = vshll.u32 %v5848_v57, 16 }
 0x11e   : > { %4377 = vmatmul.mubr.bf16.gmra.mrb[20].mxu1 %v983_v52  ;;  %v3057_v15 = vor.u32 %v3055_v32, %v3053_v44  ;;  %v3063_v52 = vshrl.u32 %v5806_v34, 16  ;;  %v3103_v32 = vshrl.u32 %v5861_v20, 16 }
 0x11f   : > { %4601 = vmatmul.mubr.bf16.gmra.mrb[4].mxu0 %v3022_v48  ;;  %4380 = vmatprep.mubr.bf16.mxu1 %v985_v60  ;;  %v3071_v48 = vshrl.u32 %v5814_v17, 16  ;;  %v3075_v60 = vshll.u32 %v5826_v39, 16  ;;  %v3089_v39 = vor.u32 %v3087_v7, %v3085_v11 }
 0x120   : > { %4604 = vmatprep.mubr.bf16.mxu0 %v3030_v62  ;;  %4633 = vmatpush3.bf16.msra.mxu0 %v5136_v51  ;;  %v3054_v51 = vsel %vm354_vm0, %v3049_v59, %v3053_v44  ;;  %v3062_v56 = vsel %vm354_vm0, %v3057_v15, %v3061_v55  ;;  %v3069_v62 = vrot.slane %v3067_v49, 1  ;;  %v3065_v63 = vor.u32 %v3063_v52, %v3061_v55  ;;  %v5190_v59 = vld [vmem:[#allocation5 + $0x118] sm:$0xff]   ;;  %v5192_v52 = vld [vmem:[#allocation5 + $0x128] sm:$0xff]  }
 0x121   : > { %4634 = vmatprep.subr.bf16.mxu0 %v5140_v0  ;;  %v3077_v34 = vrot.slane %v3075_v60, 1  ;;  %v3109_v44 = vrot.slane %v3107_v54, 1  ;;  %v5153_v15 = vld [vmem:[%s5510_s11 + $0x30] sm:$0xff]   ;;  %v5201_v54 = vld [vmem:[%s5510_s11 + $0x78] sm:$0xff]  }
 0x122   : > { %v3073_v53 = vor.u32 %v3071_v48, %v3069_v62  ;;  %v3070_v17 = vsel %vm354_vm0, %v3065_v63, %v3069_v62  ;;  %v5193_v48 = vld [vmem:[#allocation5 + $0x130] sm:$0xff]   ;;  %v5194_v60 = vld [vmem:[#allocation5 + $0x138] sm:$0xff]   ;;  %v5164_v62 = vld [vmem:[%s5510_s11 + $0x58] sm:$0xff]  }
 0x123   : > { %v3081_v42 = vor.u32 %v3079_v50, %v3077_v34  ;;  %v5165_v63 = vld [vmem:[%s5510_s11 + $0x60] sm:$0xff]   ;;  %v5197_v50 = vld [vmem:[%s5510_s11 + $0x58] sm:$0xff]  }
 0x124   : > { %4635 = vmatpush3.bf16.msra.mxu0 %v5140_v0  ;;  %v5143_v0 = vld [vmem:[%s5510_s11 + $0x10] sm:$0xff]   ;;  %v3078_v6 = vsel %vm354_vm0, %v3073_v53, %v3077_v34  ;;  %v5166_v53 = vld [vmem:[%s5510_s11 + $0x68] sm:$0xff]   ;;  %v5168_v34 = vld [vmem:[%s5510_s11 + $0x78] sm:$0xff]  }
 0x125   : > { %4636 = vmatprep.subr.bf16.mxu0 %v5145_v13  ;;  %v3086_v36 = vsel %vm354_vm0, %v3081_v42, %v3085_v11  ;;  %v5198_v11 = vld [vmem:[%s5510_s11 + $0x60] sm:$0xff]  }
 0x126   : > { %4381 = vmatmul.mubr.bf16.gmra.mrb[24].mxu1 %v987_v19  ;;  %v3093_v19 = vrot.slane %v3091_v9, 1  ;;  %v1852_v9 = vshrl.u32 %v5197_v50, 16  ;;  %v1856_v42 = vshll.u32 %v5198_v11, 16 }
 0x127   : > { %4605 = vmatmul.mubr.bf16.gmra.mrb[8].mxu0 %v3038_v16  ;;  %4384 = vmatprep.mubr.bf16.mxu1 %v989_v22  ;;  %v5151_v16 = vld [vmem:[%s5510_s11 + $0x28] sm:$0xff]   ;;  %v3099_v22 = vshll.u32 %v5861_v20, 16  ;;  %v3111_v20 = vshrl.u32 %v5873_v12, 16  ;;  %v5158_v12 = vld [vmem:[%s5510_s11 + $0x40] sm:$0xff]  }
 0x128   : > { %4608 = vmatprep.mubr.bf16.mxu0 %v3046_v61  ;;  %4637 = vmatpush3.bf16.msra.mxu0 %v5145_v13  ;;  %v5188_v13 = vld [vmem:[#allocation5 + $0x108] sm:$0xff]   ;;  %v3094_v61 = vsel %vm354_vm0, %v3089_v39, %v3093_v19  ;;  %v5199_v39 = vld [vmem:[%s5510_s11 + $0x68] sm:$0xff]  }
 0x129   : > { %4638 = vmatprep.subr.bf16.mxu0 %v5150_v18  ;;  %v3113_v49 = vor.u32 %v3111_v20, %v3109_v44 }
 0x12c   : > { %4639 = vmatpush3.bf16.msra.mxu0 %v5150_v18  ;;  %v3101_v18 = vrot.slane %v3099_v22, 1 }
 0x12d   : > { %4640 = vmatprep.subr.bf16.mxu0 %v5155_v43 }
 0x12e   : > { %4385 = vmatmul.mubr.bf16.gmra.mrb[28].mxu1 %v991_v28  ;;  %v3105_v10 = vor.u32 %v3103_v32, %v3101_v18 }
 0x12f   : > { %4609 = vmatmul.mubr.bf16.gmra.mrb[12].mxu0 %v3054_v51  ;;  %4404 = vmatprep.mubr.bf16.mxu1 %v5141_v3  ;;  %v5191_v3 = vld [vmem:[#allocation5 + $0x120] sm:$0xff]  }
 0x130   : > { %4612 = vmatprep.mubr.bf16.mxu0 %v3062_v56  ;;  %4641 = vmatpush3.bf16.msra.mxu0 %v5155_v43  ;;  %v3115_v43 = vshll.u32 %v5885_v41, 16  ;;  %v3110_v28 = vsel %vm354_vm0, %v3105_v10, %v3109_v44  ;;  %v5161_v56 = vld [vmem:[%s5510_s11 + $0x48] sm:$0xff]  }
 0x131   : > { %4642 = vmatprep.subr.bf16.mxu0 %v5160_v1 }
 0x132   : > { %v3117_v51 = vrot.slane %v3115_v43, 1 }
 0x134   : > { %4643 = vmatpush3.bf16.msra.mxu0 %v5160_v1  ;;  %v3118_v41 = vsel %vm354_vm0, %v3113_v49, %v3117_v51  ;;  %v5163_v1 = vld [vmem:[%s5510_s11 + $0x50] sm:$0xff]  }
 0x136   : > { %4405 = vmatmul.mubr.bf16.vlgmr.msra.gmra.mrb[0].mxu1 %v5143_v0  ;;  %v5195_v0 = vld [vmem:[%s5510_s11 + $0x48] sm:$0xff]  }
 0x137   : > { %4613 = vmatmul.mubr.bf16.gmra.mrb[16].mxu0 %v3070_v17  ;;  %4684 = vmatpush3.bf16.msra.mxu1 %v5909_v35  ;;  %v3095_v35 = vshrl.u32 %v5848_v57, 16  ;;  %v5156_v57 = vld [vmem:[%s5510_s11 + $0x38] sm:$0xff]   ;;  %v1836_v21 = vshrl.u32 %v5195_v0, 16  ;;  %v5196_v17 = vld [vmem:[%s5510_s11 + $0x50] sm:$0xff]  }
 0x138   : > { %4408 = vmatprep.mubr.bf16.mxu1 %v5146_v2  ;;  %4616 = vmatprep.mubr.bf16.mxu0 %v3078_v6  ;;  %v5169_v2 = vld [vmem:[%s5510_s11 + $0x80] sm:$0xff]   ;;  %v1844_v6 = vshrl.u32 %v5196_v17, 16 }
 0x139   : > { %4677 = vmatprep.subr.bf16.mxu1 %v5188_v13  ;;  %v3097_v37 = vor.u32 %v3095_v35, %v3093_v19  ;;  %v1864_v19 = vshll.u32 %v5199_v39, 16 }
 0x13b   : > { %4685 = vmatpush3.bf16.msra.mxu1 %v5188_v13  ;;  %v3102_v55 = vsel %vm354_vm0, %v3097_v37, %v3101_v18  ;;  %v1880_v18 = vshll.u32 %v5201_v54, 16 }
 0x13c   : > { %4678 = vmatprep.subr.bf16.mxu1 %v5189_v26 }
 0x13e   : > { %4409 = vmatmul.mubr.bf16.gmra.mrb[4].mxu1 %v5148_v14 }
 0x13f   : > { %4617 = vmatmul.mubr.bf16.gmra.mrb[20].mxu0 %v3086_v36  ;;  %4412 = vmatprep.mubr.bf16.mxu1 %v5151_v16  ;;  %v1860_v16 = vshrl.u32 %v5198_v11, 16  ;;  %v1868_v36 = vshrl.u32 %v5199_v39, 16 }
 0x140   : > { %4620 = vmatprep.mubr.bf16.mxu0 %v3094_v61  ;;  %4686 = vmatpush3.bf16.msra.mxu1 %v5189_v26  ;;  %v5200_v26 = vld [vmem:[%s5510_s11 + $0x70] sm:$0xff]  }
 0x141   : > { %4679 = vmatprep.subr.bf16.mxu1 %v5190_v59  ;;  %v1872_v35 = vshll.u32 %v5200_v26, 16  ;;  %v1876_v10 = vshrl.u32 %v5200_v26, 16 }
 0x143   : > { %v1874_v32 = vrot.slane %v1872_v35, 1 }
 0x144   : > { %4687 = vmatpush3.bf16.msra.mxu1 %v5190_v59  ;;  %v1884_v59 = vshrl.u32 %v5201_v54, 16 }
 0x145   : > { %4680 = vmatprep.subr.bf16.mxu1 %v5191_v3 }
 0x146   : > { %4413 = vmatmul.mubr.bf16.gmra.mrb[8].mxu1 %v5153_v15  ;;  %v5202_v15 = vld [vmem:[%s5510_s11 + $0x80] sm:$0xff]  }
 0x147   : > { %4621 = vmatmul.mubr.bf16.gmra.mrb[24].mxu0 %v3102_v55  ;;  %4416 = vmatprep.mubr.bf16.mxu1 %v5156_v57  ;;  %v1888_v57 = vshll.u32 %v5202_v15, 16  ;;  %v1882_v55 = vrot.slane %v1880_v18, 1 }
 0x148   : > { %4624 = vmatprep.mubr.bf16.mxu0 %v3110_v28  ;;  %4688 = vmatpush3.bf16.msra.mxu1 %v5191_v3  ;;  %v1892_v28 = vshrl.u32 %v5202_v15, 16  ;;  %v5203_v3 = vld [vmem:[%s5510_s11 + $0x88] ss:$0 sps:$4 sm:$0x11]  }
 0x149   : > { %4681 = vmatprep.subr.bf16.mxu1 %v5192_v52  ;;  %v1890_v20 = vrot.slane %v1888_v57, 1  ;;  %v1896_v49 = vshll.u32 %v5203_v3, 16 }
 0x14c   : > { %4689 = vmatpush3.bf16.msra.mxu1 %v5192_v52  ;;  %v1894_v52 = vor.u32 %v1892_v28, %v1890_v20 }
 0x14d   : > { %4682 = vmatprep.subr.bf16.mxu1 %v5193_v48 }
 0x14e   : > { %4417 = vmatmul.mubr.bf16.gmra.mrb[12].mxu1 %v5158_v12  ;;  %v1898_v12 = vrot.slane %v1896_v49, 1 }
 0x14f   : > { %4625 = vmatmul.mubr.bf16.gmra.mrb[28].mxu0 %v3118_v41  ;;  %4420 = vmatprep.mubr.bf16.mxu1 %v5161_v56 }
 0x150   : > { %4644 = vmatprep.mubr.bf16.mxu0 %v5798_v29  ;;  %4690 = vmatpush3.bf16.msra.mxu1 %v5193_v48  ;;  %v5167_v29 = vld [vmem:[%s5510_s11 + $0x70] sm:$0xff]  }
 0x151   : > { %4683 = vmatprep.subr.bf16.mxu1 %v5194_v60 }
 0x154   : > { %4691 = vmatpush3.bf16.msra.mxu1 %v5194_v60 }
 0x156   : > { %4421 = vmatmul.mubr.bf16.gmra.mrb[16].mxu1 %v5163_v1 }
 0x157   : > { %4645 = vmatmul.mubr.bf16.vlgmr.msra.gmra.mrb[0].mxu0 %v5749_v31  ;;  %4424 = vmatprep.mubr.bf16.mxu1 %v5164_v62  ;;  %v1840_v31 = vshll.u32 %v5196_v17, 16 }
 0x158   : > { %4648 = vmatprep.mubr.bf16.mxu0 %v5791_v25  ;;  %v1838_v25 = vor.u32 %v1836_v21, %v5633_v23 }
 0x15e   : > { %4425 = vmatmul.mubr.bf16.gmra.mrb[20].mxu1 %v5165_v63 }
 0x15f   : > { %4649 = vmatmul.mubr.bf16.gmra.mrb[4].mxu0 %v5801_v30  ;;  %4428 = vmatprep.mubr.bf16.mxu1 %v5166_v53  ;;  %v1842_v30 = vrot.slane %v1840_v31, 1 }
 0x160   : > { %4652 = vmatprep.mubr.bf16.mxu0 %v5809_v47  ;;  %v1848_v47 = vshll.u32 %v5197_v50, 16 }
 0x161   : > { %v1843_v7 = vsel %vm354_vm0, %v1838_v25, %v1842_v30 }
 0x162   : > { %v1850_v13 = vrot.slane %v1848_v47, 1 }
 0x164   : > { %v1854_v23 = vor.u32 %v1852_v9, %v1850_v13 }
 0x166   : > { %4429 = vmatmul.mubr.bf16.gmra.mrb[24].mxu1 %v5167_v29 }
 0x167   : > { %4653 = vmatmul.mubr.bf16.gmra.mrb[8].mxu0 %v5817_v38  ;;  %4432 = vmatprep.mubr.bf16.mxu1 %v5168_v34  ;;  %v1846_v38 = vor.u32 %v1844_v6, %v1842_v30 }
 0x168   : > { %4656 = vmatprep.mubr.bf16.mxu0 %v5821_v24  ;;  %v1858_v24 = vrot.slane %v1856_v42, 1 }
 0x169   : > { %v1851_v14 = vsel %vm354_vm0, %v1846_v38, %v1850_v13 }
 0x16a   : > { %v1859_v22 = vsel %vm354_vm0, %v1854_v23, %v1858_v24 }
 0x16e   : > { %4433 = vmatmul.mubr.bf16.gmra.mrb[28].mxu1 %v5169_v2 }
 0x16f   : > { %4657 = vmatmul.mubr.bf16.gmra.mrb[12].mxu0 %v5829_v40  ;;  %4468 = vmatprep.mubr.bf16.mxu1 %v1843_v7  ;;  %v1866_v40 = vrot.slane %v1864_v19, 1 }
 0x170   : > { %4660 = vmatprep.mubr.bf16.mxu0 %v5835_v46  ;;  %v1862_v46 = vor.u32 %v1860_v16, %v1858_v24 }
 0x171   : > { %v1870_v61 = vor.u32 %v1868_v36, %v1866_v40 }
 0x172   : > { %v1867_v37 = vsel %vm354_vm0, %v1862_v46, %v1866_v40 }
 0x173   : > { %v1875_v44 = vsel %vm354_vm0, %v1870_v61, %v1874_v32 }
 0x176   : > { %4469 = vmatmul.mubr.bf16.vlgmr.msra.gmra.mrb[16].mxu1 %v1851_v14 }
 0x177   : > { %4661 = vmatmul.mubr.bf16.gmra.mrb[16].mxu0 %v5843_v45  ;;  %4472 = vmatprep.mubr.bf16.mxu1 %v1859_v22  ;;  %v1878_v45 = vor.u32 %v1876_v10, %v1874_v32 }
 0x178   : > { %4664 = vmatprep.mubr.bf16.mxu0 %v5851_v58  ;;  %v1886_v58 = vor.u32 %v1884_v59, %v1882_v55 }
 0x179   : > { %v1883_v43 = vsel %vm354_vm0, %v1878_v45, %v1882_v55 }
 0x17a   : > { %v1891_v51 = vsel %vm354_vm0, %v1886_v58, %v1890_v20 }
 0x17e   : > { %4473 = vmatmul.mubr.bf16.gmra.mrb[20].mxu1 %v1867_v37 }
 0x17f   : > { %4665 = vmatmul.mubr.bf16.gmra.mrb[20].mxu0 %v5857_v33  ;;  %4476 = vmatprep.mubr.bf16.mxu1 %v1875_v44  ;;  %v1899_v33 = vsel %vm354_vm0, %v1894_v52, %v1898_v12 }
 0x180   : > { %4668 = vmatprep.mubr.bf16.mxu0 %v5864_v4 }
 0x186   : > { %4477 = vmatmul.mubr.bf16.gmra.mrb[24].mxu1 %v1883_v43 }
 0x187   : > { %4669 = vmatmul.mubr.bf16.gmra.mrb[24].mxu0 %v5876_v27  ;;  %4480 = vmatprep.mubr.bf16.mxu1 %v1891_v51 }
 0x188   : > { %4672 = vmatprep.mubr.bf16.mxu0 %v5882_v8 }
 0x18e   : > { %4481 = vmatmul.mubr.bf16.gmra.mrb[28].mxu1 %v1899_v33 }
 0x18f   : > { %4673 = vmatmul.mubr.bf16.gmra.mrb[28].mxu0 %v5897_v5  ;;  %v6013_v5 = vld [vmem:[%s6134_s2] ss:$0 sm:$0xff] }
 0x209   : > { %v4406_v4 = vpop.f32.mrb[0].mxu1 }
 0x20a   : > { %v1476_v56 = vpop.f32.mrb[1].mxu1 }
 0x20b   : > { %v4407_v41 = vpop.f32.mrb[2].mxu1 }
 0x20c   : > { %v1479_v48 = vpop.f32.mrb[3].mxu1 }
 0x211   : > { %v4410_v60 = vpop.f32.mrb[4].mxu1 }
 0x212   : > { %v1492_v1 = vpop.f32.mrb[5].mxu1 }
 0x213   : > { %v4411_v62 = vpop.f32.mrb[6].mxu1 }
 0x214   : > { %v1495_v63 = vpop.f32.mrb[7].mxu1 }
 0x219   : > { %v4414_v27 = vpop.f32.mrb[8].mxu1 }
 0x21a   : > { %v1508_v53 = vpop.f32.mrb[9].mxu1 }
 0x21b   : > { %v4415_v29 = vpop.f32.mrb[10].mxu1 }
 0x21c   : > { %v1511_v34 = vpop.f32.mrb[11].mxu1 }
 0x221   : > { %v4418_v0 = vpop.f32.mrb[12].mxu1 }
 0x222   : > { %v1524_v8 = vpop.f32.mrb[13].mxu1 }
 0x223   : > { %v4419_v21 = vpop.f32.mrb[14].mxu1 }
 0x224   : > { %v1527_v17 = vpop.f32.mrb[15].mxu1 }
 0x22a   : > { %v4646_v31 = vpop.f32.mrb[0].mxu0 }
 0x22b   : > { %v4692_v25 = vadd.f32 %v4646_v31, %v4406_v4  ;;  %v3528_v30 = vpop.f32.mrb[1].mxu0 }
 0x22c   : > { %v4693_v2 = vadd.f32 %v3528_v30, %v1476_v56  ;;  %v4647_v50 = vpop.f32.mrb[2].mxu0 }
 0x22d   : > { %v3696_v47 = vadd.f32 %v4692_v25, %v6013_v5  ;;  %v4694_v6 = vadd.f32 %v4647_v50, %v4407_v41  ;;  %v3531_v7 = vpop.f32.mrb[3].mxu0 }
 0x22e   : > { %v3694_v9 = vadd.f32 %v4693_v2, %v6013_v5  ;;  %v4695_v11 = vadd.f32 %v3531_v7, %v1479_v48 }
 0x22f   : > { %3728 = vst [vmem:[%s6017_s9 + $0x10] sm:$0xff] %v3696_v47  ;;  %v3697_v42 = vadd.f32 %v4694_v6, %v6013_v5 }
 0x230   : > { %3726 = vst [vmem:[%s6017_s9] sm:$0xff] %v3694_v9  ;;  %v3695_v13 = vadd.f32 %v4695_v11, %v6013_v5 }
 0x231   : > { %3729 = vst [vmem:[%s6017_s9 + $0x18] sm:$0xff] %v3697_v42 }
 0x232   : > { %3727 = vst [vmem:[%s6017_s9 + $0x8] sm:$0xff] %v3695_v13  ;;  %v4650_v38 = vpop.f32.mrb[4].mxu0 }
 0x233   : > { %v4696_v23 = vadd.f32 %v4650_v38, %v4410_v60  ;;  %v3544_v24 = vpop.f32.mrb[5].mxu0 }
 0x234   : > { %v4697_v39 = vadd.f32 %v3544_v24, %v1492_v1  ;;  %v4651_v19 = vpop.f32.mrb[6].mxu0 }
 0x235   : > { %v3700_v14 = vadd.f32 %v4696_v23, %v6013_v5  ;;  %v4698_v16 = vadd.f32 %v4651_v19, %v4411_v62  ;;  %v3547_v22 = vpop.f32.mrb[7].mxu0 }
 0x236   : > { %v3698_v36 = vadd.f32 %v4697_v39, %v6013_v5  ;;  %v4699_v26 = vadd.f32 %v3547_v22, %v1495_v63 }
 0x237   : > { %3732 = vst [vmem:[%s6017_s9 + $0x30] sm:$0xff] %v3700_v14  ;;  %v3701_v35 = vadd.f32 %v4698_v16, %v6013_v5 }
 0x238   : > { %3730 = vst [vmem:[%s6017_s9 + $0x20] sm:$0xff] %v3698_v36  ;;  %v3699_v40 = vadd.f32 %v4699_v26, %v6013_v5 }
 0x239   : > { %3733 = vst [vmem:[%s6017_s9 + $0x38] sm:$0xff] %v3701_v35 }
 0x23a   : > { %3731 = vst [vmem:[%s6017_s9 + $0x28] sm:$0xff] %v3699_v40  ;;  %v4654_v46 = vpop.f32.mrb[8].mxu0 }
 0x23b   : > { %v4700_v61 = vadd.f32 %v4654_v46, %v4414_v27  ;;  %v3560_v32 = vpop.f32.mrb[9].mxu0 }
 0x23c   : > { %v4701_v54 = vadd.f32 %v3560_v32, %v1508_v53  ;;  %v4655_v18 = vpop.f32.mrb[10].mxu0 }
 0x23d   : > { %v3704_v37 = vadd.f32 %v4700_v61, %v6013_v5  ;;  %v4702_v10 = vadd.f32 %v4655_v18, %v4415_v29  ;;  %v3563_v44 = vpop.f32.mrb[11].mxu0 }
 0x23e   : > { %v3702_v59 = vadd.f32 %v4701_v54, %v6013_v5  ;;  %v4703_v15 = vadd.f32 %v3563_v44, %v1511_v34 }
 0x23f   : > { %3736 = vst [vmem:[%s6017_s9 + $0x50] sm:$0xff] %v3704_v37  ;;  %v3705_v57 = vadd.f32 %v4702_v10, %v6013_v5 }
 0x240   : > { %3734 = vst [vmem:[%s6017_s9 + $0x40] sm:$0xff] %v3702_v59  ;;  %v3703_v55 = vadd.f32 %v4703_v15, %v6013_v5 }
 0x241   : > { %3737 = vst [vmem:[%s6017_s9 + $0x58] sm:$0xff] %v3705_v57 }
 0x242   : > { %3735 = vst [vmem:[%s6017_s9 + $0x48] sm:$0xff] %v3703_v55  ;;  %v4658_v45 = vpop.f32.mrb[12].mxu0 }
 0x243   : > { %v4704_v58 = vadd.f32 %v4658_v45, %v4418_v0  ;;  %v3576_v20 = vpop.f32.mrb[13].mxu0 }
 0x244   : > { %v4705_v43 = vadd.f32 %v3576_v20, %v1524_v8  ;;  %v4659_v28 = vpop.f32.mrb[14].mxu0 }
 0x245   : > { %v3708_v3 = vadd.f32 %v4704_v58, %v6013_v5  ;;  %v4706_v49 = vadd.f32 %v4659_v28, %v4419_v21  ;;  %v3579_v51 = vpop.f32.mrb[15].mxu0 }
 0x246   : > { %v3706_v52 = vadd.f32 %v4705_v43, %v6013_v5  ;;  %v4707_v12 = vadd.f32 %v3579_v51, %v1527_v17 }
 0x247   : > { %3740 = vst [vmem:[%s6017_s9 + $0x70] sm:$0xff] %v3708_v3  ;;  %v3709_v33 = vadd.f32 %v4706_v49, %v6013_v5 }
 0x248   : > { %3738 = vst [vmem:[%s6017_s9 + $0x60] sm:$0xff] %v3706_v52  ;;  %v3707_v4 = vadd.f32 %v4707_v12, %v6013_v5 }
 0x249   : > { %3741 = vst [vmem:[%s6017_s9 + $0x78] sm:$0xff] %v3709_v33  ;;  %v4470_v56 = vpop.f32.mrb[16].mxu1 }
 0x24a   : > { %3739 = vst [vmem:[%s6017_s9 + $0x68] sm:$0xff] %v3707_v4  ;;  %v4662_v41 = vpop.f32.mrb[16].mxu0  ;;  %v2062_v48 = vpop.f32.mrb[17].mxu1 }
 0x24b   : > { %v4708_v60 = vadd.f32 %v4662_v41, %v4470_v56  ;;  %v3592_v1 = vpop.f32.mrb[17].mxu0  ;;  %v4471_v62 = vpop.f32.mrb[18].mxu1 }
 0x24c   : > { %v4709_v63 = vadd.f32 %v3592_v1, %v2062_v48  ;;  %v4663_v27 = vpop.f32.mrb[18].mxu0  ;;  %v2065_v53 = vpop.f32.mrb[19].mxu1 }
 0x24d   : > { %v3712_v29 = vadd.f32 %v4708_v60, %v6013_v5  ;;  %v4710_v34 = vadd.f32 %v4663_v27, %v4471_v62  ;;  %v3595_v0 = vpop.f32.mrb[19].mxu0 }
 0x24e   : > { %v3710_v8 = vadd.f32 %v4709_v63, %v6013_v5  ;;  %v4711_v21 = vadd.f32 %v3595_v0, %v2065_v53 }
 0x24f   : > { %3744 = vst [vmem:[%s6017_s9 + $0x90] sm:$0xff] %v3712_v29  ;;  %v3713_v17 = vadd.f32 %v4710_v34, %v6013_v5 }
 0x250   : > { %3742 = vst [vmem:[%s6017_s9 + $0x80] sm:$0xff] %v3710_v8  ;;  %v3711_v31 = vadd.f32 %v4711_v21, %v6013_v5 }
 0x251   : > { %3745 = vst [vmem:[%s6017_s9 + $0x98] sm:$0xff] %v3713_v17  ;;  %v4474_v25 = vpop.f32.mrb[20].mxu1 }
 0x252   : > { %3743 = vst [vmem:[%s6017_s9 + $0x88] sm:$0xff] %v3711_v31  ;;  %v4666_v30 = vpop.f32.mrb[20].mxu0  ;;  %v2078_v2 = vpop.f32.mrb[21].mxu1 }
 0x253   : > { %v4712_v50 = vadd.f32 %v4666_v30, %v4474_v25  ;;  %v3608_v47 = vpop.f32.mrb[21].mxu0  ;;  %v4475_v6 = vpop.f32.mrb[22].mxu1 }
 0x254   : > { %v4713_v7 = vadd.f32 %v3608_v47, %v2078_v2  ;;  %v4667_v9 = vpop.f32.mrb[22].mxu0  ;;  %v2081_v11 = vpop.f32.mrb[23].mxu1 }
 0x255   : > { %v3716_v42 = vadd.f32 %v4712_v50, %v6013_v5  ;;  %v4714_v13 = vadd.f32 %v4667_v9, %v4475_v6  ;;  %v3611_v38 = vpop.f32.mrb[23].mxu0 }
 0x256   : > { %v3714_v23 = vadd.f32 %v4713_v7, %v6013_v5  ;;  %v4715_v24 = vadd.f32 %v3611_v38, %v2081_v11 }
 0x257   : > { %3748 = vst [vmem:[%s6017_s9 + $0xb0] sm:$0xff] %v3716_v42  ;;  %v3717_v39 = vadd.f32 %v4714_v13, %v6013_v5 }
 0x258   : > { %3746 = vst [vmem:[%s6017_s9 + $0xa0] sm:$0xff] %v3714_v23  ;;  %v3715_v19 = vadd.f32 %v4715_v24, %v6013_v5 }
 0x259   : > { %3749 = vst [vmem:[%s6017_s9 + $0xb8] sm:$0xff] %v3717_v39  ;;  %v4478_v14 = vpop.f32.mrb[24].mxu1 }
 0x25a   : > { %3747 = vst [vmem:[%s6017_s9 + $0xa8] sm:$0xff] %v3715_v19  ;;  %v4670_v16 = vpop.f32.mrb[24].mxu0  ;;  %v2094_v22 = vpop.f32.mrb[25].mxu1 }
 0x25b   : > { %v4716_v36 = vadd.f32 %v4670_v16, %v4478_v14  ;;  %v3624_v26 = vpop.f32.mrb[25].mxu0  ;;  %v4479_v35 = vpop.f32.mrb[26].mxu1 }
 0x25c   : > { %v4717_v40 = vadd.f32 %v3624_v26, %v2094_v22  ;;  %v4671_v46 = vpop.f32.mrb[26].mxu0  ;;  %v2097_v61 = vpop.f32.mrb[27].mxu1 }
 0x25d   : > { %v3720_v32 = vadd.f32 %v4716_v36, %v6013_v5  ;;  %v4718_v54 = vadd.f32 %v4671_v46, %v4479_v35  ;;  %v3627_v18 = vpop.f32.mrb[27].mxu0 }
 0x25e   : > { %v3718_v37 = vadd.f32 %v4717_v40, %v6013_v5  ;;  %v4719_v10 = vadd.f32 %v3627_v18, %v2097_v61 }
 0x25f   : > { %3752 = vst [vmem:[%s6017_s9 + $0xd0] sm:$0xff] %v3720_v32  ;;  %v3721_v44 = vadd.f32 %v4718_v54, %v6013_v5 }
 0x260   : > { %3750 = vst [vmem:[%s6017_s9 + $0xc0] sm:$0xff] %v3718_v37  ;;  %v3719_v59 = vadd.f32 %v4719_v10, %v6013_v5 }
 0x261   : > { %3753 = vst [vmem:[%s6017_s9 + $0xd8] sm:$0xff] %v3721_v44  ;;  %v4482_v15 = vpop.f32.mrb[28].mxu1 }
 0x262   : > { %3751 = vst [vmem:[%s6017_s9 + $0xc8] sm:$0xff] %v3719_v59  ;;  %v4674_v57 = vpop.f32.mrb[28].mxu0  ;;  %v2110_v55 = vpop.f32.mrb[29].mxu1 }
 0x263   : > { %v4720_v45 = vadd.f32 %v4674_v57, %v4482_v15  ;;  %v3640_v58 = vpop.f32.mrb[29].mxu0  ;;  %v4483_v20 = vpop.f32.mrb[30].mxu1 }
 0x264   : > { %v4721_v43 = vadd.f32 %v3640_v58, %v2110_v55  ;;  %v4675_v28 = vpop.f32.mrb[30].mxu0  ;;  %v2113_v3 = vpop.f32.mrb[31].mxu1 }
 0x265   : > { %v3724_v49 = vadd.f32 %v4720_v45, %v6013_v5  ;;  %v4722_v51 = vadd.f32 %v4675_v28, %v4483_v20  ;;  %v3643_v52 = vpop.f32.mrb[31].mxu0 }
 0x266   : > { %v3722_v12 = vadd.f32 %v4721_v43, %v6013_v5  ;;  %v4723_v33 = vadd.f32 %v3643_v52, %v2113_v3 }
 0x267   : > { %3756 = vst [vmem:[%s6017_s9 + $0xf0] sm:$0xff] %v3724_v49  ;;  %v3725_v4 = vadd.f32 %v4722_v51, %v6013_v5 }
 0x268   : > { %3754 = vst [vmem:[%s6017_s9 + $0xe0] sm:$0xff] %v3722_v12  ;;  %v3723_v56 = vadd.f32 %v4723_v33, %v6013_v5 }
 0x269   : > { %3757 = vst [vmem:[%s6017_s9 + $0xf8] sm:$0xff] %v3725_v4 }
 0x26a   : > { %3755 = vst [vmem:[%s6017_s9 + $0xe8] sm:$0xff] %v3723_v56 }
 0x26b   : > { %5275 = shalt.err (!%p5272_p7)
}
 0x26c   : > { %s5276_s30 = scalar_lea.hbm %s6082_s27, 4096  ;;  %s5280_s11 = scalar_lea.hbm %s6135_s3, 8192 }
 0x26d   : > { %p5277_p9 = scmp.ne.s32.totalorder %s6082_s27, %s5276_s30  ;;  %p5281_p5 = scmp.lt.u32.totalorder %s6082_s27, %s6135_s3 }
 0x26e   : > { %p5282_p13 = scmp.lt.u32.totalorder %s5280_s11, %s5276_s30  ;;  %p5284_p4 = scmp.lt.u32.totalorder %s5276_s30, %s6082_s27 }
 0x26f   : > { %p5278_p1 = pnand %p5277_p9, %p5455_p12 }
 0x270   : > { %p5283_p2 = por %p5282_p13, %p5281_p5 }
 0x271   : > { %p5279_p0 = pneg %p5278_p1 }
 0x272   : > { %p5285_p6 = por %p5284_p4, %p5283_p2 }
 0x274   : > { %p5286_p8 = pnand %p5285_p6, %p5279_p0 }
 0x276   : > { %5289 = shalt.err (!%p5286_p8)
}
 0x277   : > { %s5339_s8 = smov 128   ;;  %s5340_s9 = smov 8  }
 0x278   : > { %4957 = dma.vmem_to_hbm [thread:$0]  (%p5455_p12), %s6084_s25, 4096, %s6082_s27, %s3759_s16, %s5339_s8, %s5339_s8, %s5340_s9  }
 0x279 PF: > { %s3787_s29 = sand.u32 1, %s5320_s12   ;;  %p6150_p10 = scmp.ne.s32.totalorder %s6140_s19, 0 }
 0x27a   : > { %p6151_p11 = scmp.ge.s32.totalorder %s5332_s15, 2  ;;  %s3788_s4 = scalar_lea.sflag [#allocation4], %s3787_s29 }
 0x27c   : > { %p4968_p3 = pnand %p6151_p11, %p6150_p10 }
 0x27e   : > { %5315 = dma.done.wait (!%p4968_p3), %s3788_s4, 4096  }
 0x27f   : > { %5317 = vsyncadd (!%p4968_p3), %s3788_s4, 4294963200  ;;  %p17_p7 = scmp.ge.s32.totalorder %s5417_s24, 4   ;;  %s6152_s12 = smov %s5324_s13 }
 0x280   : > { %s6153_s13 = smov %s5328_s14  ;;  %s6154_s14 = smov %s5451_s17 }
 0x281   : > { %s6155_s15 = smov %s5417_s24  ;;  %19 = sbr.rel (!%p17_p7) target bundleno = 6 (0x6), region = 89 }
 0x288   :  { %3793 = vsyncpa [#allocation3], 1 }
 0x289   :  { %3795 = vsyncpa [#allocation3 + $0x1], 1 }
 0x28a   :  { %3796 = vsyncpa [#allocation6], 1 }
 0x28b   :  { %3797 = vsyncpa [#allocation4], 1 }
 0x28c   :  { %3799 = vsyncpa [#allocation4 + $0x1], 1 }

</bundles_post_ra>
